<compile_context>
chip_gen: v5e
topology: v5e:2x2
jax: 0.10.0
libtpu: 0.0.40
codegen_flags: <defaults>
</compile_context>

<pallas_src>
import functools

import jax
import jax.numpy as jnp
import numpy as np
from jax.experimental import pallas as pl
from jax.experimental.pallas import tpu as pltpu

SIGMA = 1.5
KSIZE = 2 * round(SIGMA * 4) + 1      # 13
KA = KSIZE // 2                       # 6
KB = KA                               # odd kernel -> symmetric padding


def _gauss_taps():
    x = np.arange(KSIZE, dtype=np.float64)
    mean = (KSIZE - 1) / 2.0
    g = np.exp(-((x - mean) ** 2) / (2.0 * SIGMA ** 2))
    g = g / g.sum()                   # outer(g, g) then sums to 1, as in PyTorch
    return tuple(float(t) for t in g)


TAPS = _gauss_taps()


def _blur_kernel(x_ref, o_ref, *, h, w):
    """Separable 13-tap Gaussian blur on a (TCH, h+2*KA, w+2*KA) block."""
    x = x_ref[...]                                     # (tch, h+12, w+12) f32
    # 1-D pass along W (lane axis): contiguous static slices + scalar FMAs.
    acc_w = TAPS[0] * x[:, :, 0:w]
    for j in range(1, KSIZE):
        acc_w = acc_w + TAPS[j] * x[:, :, j:j + w]
    # 1-D pass along H (sublane axis).
    acc = TAPS[0] * acc_w[:, 0:h, :]
    for i in range(1, KSIZE):
        acc = acc + TAPS[i] * acc_w[:, i:i + h, :]
    o_ref[...] = acc.astype(o_ref.dtype)


def anti_alias_interpolation2d(x, scale):
    """x: (B, C, H, W) float32. Matches AntiAliasInterpolation2d.forward."""
    if scale == 1.0:
        return x
    int_inv_scale = int(1.0 / scale)

    b, c, h, w = x.shape
    bc = b * c
    h_pad, w_pad = h + KA + KB, w + KA + KB

    # F.pad(input, (ka, kb, ka, kb)) and NCHW -> (B*C, H_pad, W_pad) in XLA.
    x_flat = x.reshape(bc, h, w)
    x_flat = jnp.pad(x_flat, ((0, 0), (KA, KB), (KA, KB)))

    # Channel-tile size: ~2 MiB per input block (double-buffered ~4 MiB), and
    # at least 2 grid steps so both v7x TensorCores get work.
    bytes_per_ch = 4 * h_pad * w_pad
    tch = max(1, (2 * 1024 * 1024) // bytes_per_ch)
    if bc > 1:
        tch = min(tch, (bc + 1) // 2)
    tch = min(tch, bc)
    n_blk = -(-bc // tch)                 # cdiv
    bc_pad = n_blk * tch
    if bc_pad != bc:
        x_flat = jnp.pad(x_flat, ((0, bc_pad - bc), (0, 0), (0, 0)))

    kernel = functools.partial(_blur_kernel, h=h, w=w)
    blurred = pl.pallas_call(
        kernel,
        out_shape=jax.ShapeDtypeStruct((bc_pad, h, w), x.dtype),
        grid_spec=pltpu.PrefetchScalarGridSpec(
            num_scalar_prefetch=0,
            grid=(n_blk,),
            in_specs=[pl.BlockSpec((tch, h_pad, w_pad), lambda i: (i, 0, 0))],
            out_specs=pl.BlockSpec((tch, h, w), lambda i: (i, 0, 0)),
        ),
        compiler_params=pltpu.CompilerParams(
            dimension_semantics=("parallel",)),
    )(x_flat)

    blurred = blurred[:bc].reshape(b, c, h, w)
    # TODO(synk): fuse the ::int_inv_scale subsample into the kernel (needs
    # strided lane stores in Mosaic); here it is a cheap XLA slice.
    return blurred[:, :, ::int_inv_scale, ::int_inv_scale]


if __name__ == "__main__":
    key = jax.random.PRNGKey(0)
    B, C, H, W = 2, 4, 16, 16
    scale = 0.25
    x = jax.random.normal(key, (B, C, H, W), jnp.float32)

    out = anti_alias_interpolation2d(x, scale)
    out = jax.block_until_ready(out)

    # Reference: direct (non-separable) 13x13 depthwise conv in plain JAX,
    # exactly mirroring the PyTorch module's pad -> grouped conv2d -> stride.
    taps = jnp.asarray(TAPS, jnp.float32)
    k2d = jnp.outer(taps, taps)
    xp = jnp.pad(x, ((0, 0), (0, 0), (KA, KB), (KA, KB)))
    ref = jnp.zeros((B, C, H, W), jnp.float32)
    for i in range(KSIZE):
        for j in range(KSIZE):
            ref = ref + k2d[i, j] * xp[:, :, i:i + H, j:j + W]
    inv = int(1.0 / scale)
    ref = ref[:, :, ::inv, ::inv]

    assert out.shape == (B, C, H // inv, W // inv), out.shape
    assert jnp.allclose(out, ref, atol=1e-5, rtol=1e-5), float(
        jnp.max(jnp.abs(out - ref)))

    print("KERNEL_OK")
</pallas_src>

<mosaic_0001>
module attributes {stable_mosaic.version = 11 : i64} {
  func.func @_blur_kernel(%arg0: i32, %arg1: memref<4x28x28xf32, #tpu.memory_space<vmem>>, %arg2: memref<4x16x16xf32, #tpu.memory_space<vmem>>) attributes {dimension_semantics = [#tpu.dimension_semantics<parallel>], iteration_bounds = array<i64: 2>, scalar_prefetch = 0 : i64, scratch_operands = 0 : i64, tpu.core_type = #tpu.core_type<tc>, window_params = [{transform_indices = @transform_0, window_bounds = array<i64: 4, 28, 28>}, {transform_indices = @transform_1, window_bounds = array<i64: 4, 16, 16>}]} {
    %c0 = arith.constant 0 : index
    %c0_0 = arith.constant 0 : index
    %c0_1 = arith.constant 0 : index
    %0 = vector.load %arg1[%c0, %c0_0, %c0_1] : memref<4x28x28xf32, #tpu.memory_space<vmem>>, vector<4x28x28xf32>
    %1 = vector.extract_strided_slice %0 {offsets = [0, 0, 0], sizes = [4, 28, 16], strides = [1, 1, 1]} : vector<4x28x28xf32> to vector<4x28x16xf32>
    %cst = arith.constant 8.92210664E-5 : f32
    %2 = vector.broadcast %cst : f32 to vector<4x28x16xf32>
    %3 = arith.mulf %2, %1 : vector<4x28x16xf32>
    %4 = vector.extract_strided_slice %0 {offsets = [0, 0, 1], sizes = [4, 28, 16], strides = [1, 1, 1]} : vector<4x28x28xf32> to vector<4x28x16xf32>
    %cst_2 = arith.constant 0.00102819654 : f32
    %5 = vector.broadcast %cst_2 : f32 to vector<4x28x16xf32>
    %6 = arith.mulf %5, %4 : vector<4x28x16xf32>
    %7 = arith.addf %3, %6 : vector<4x28x16xf32>
    %8 = vector.extract_strided_slice %0 {offsets = [0, 0, 2], sizes = [4, 28, 16], strides = [1, 1, 1]} : vector<4x28x28xf32> to vector<4x28x16xf32>
    %cst_3 = arith.constant 0.0075974022 : f32
    %9 = vector.broadcast %cst_3 : f32 to vector<4x28x16xf32>
    %10 = arith.mulf %9, %8 : vector<4x28x16xf32>
    %11 = arith.addf %7, %10 : vector<4x28x16xf32>
    %12 = vector.extract_strided_slice %0 {offsets = [0, 0, 3], sizes = [4, 28, 16], strides = [1, 1, 1]} : vector<4x28x28xf32> to vector<4x28x16xf32>
    %cst_4 = arith.constant 0.0359943472 : f32
    %13 = vector.broadcast %cst_4 : f32 to vector<4x28x16xf32>
    %14 = arith.mulf %13, %12 : vector<4x28x16xf32>
    %15 = arith.addf %11, %14 : vector<4x28x16xf32>
    %16 = vector.extract_strided_slice %0 {offsets = [0, 0, 4], sizes = [4, 28, 16], strides = [1, 1, 1]} : vector<4x28x28xf32> to vector<4x28x16xf32>
    %cst_5 = arith.constant 0.109341174 : f32
    %17 = vector.broadcast %cst_5 : f32 to vector<4x28x16xf32>
    %18 = arith.mulf %17, %16 : vector<4x28x16xf32>
    %19 = arith.addf %15, %18 : vector<4x28x16xf32>
    %20 = vector.extract_strided_slice %0 {offsets = [0, 0, 5], sizes = [4, 28, 16], strides = [1, 1, 1]} : vector<4x28x28xf32> to vector<4x28x16xf32>
    %cst_6 = arith.constant 0.21296753 : f32
    %21 = vector.broadcast %cst_6 : f32 to vector<4x28x16xf32>
    %22 = arith.mulf %21, %20 : vector<4x28x16xf32>
    %23 = arith.addf %19, %22 : vector<4x28x16xf32>
    %24 = vector.extract_strided_slice %0 {offsets = [0, 0, 6], sizes = [4, 28, 16], strides = [1, 1, 1]} : vector<4x28x28xf32> to vector<4x28x16xf32>
    %cst_7 = arith.constant 0.26596427 : f32
    %25 = vector.broadcast %cst_7 : f32 to vector<4x28x16xf32>
    %26 = arith.mulf %25, %24 : vector<4x28x16xf32>
    %27 = arith.addf %23, %26 : vector<4x28x16xf32>
    %28 = vector.extract_strided_slice %0 {offsets = [0, 0, 7], sizes = [4, 28, 16], strides = [1, 1, 1]} : vector<4x28x28xf32> to vector<4x28x16xf32>
    %cst_8 = arith.constant 0.21296753 : f32
    %29 = vector.broadcast %cst_8 : f32 to vector<4x28x16xf32>
    %30 = arith.mulf %29, %28 : vector<4x28x16xf32>
    %31 = arith.addf %27, %30 : vector<4x28x16xf32>
    %32 = vector.extract_strided_slice %0 {offsets = [0, 0, 8], sizes = [4, 28, 16], strides = [1, 1, 1]} : vector<4x28x28xf32> to vector<4x28x16xf32>
    %cst_9 = arith.constant 0.109341174 : f32
    %33 = vector.broadcast %cst_9 : f32 to vector<4x28x16xf32>
    %34 = arith.mulf %33, %32 : vector<4x28x16xf32>
    %35 = arith.addf %31, %34 : vector<4x28x16xf32>
    %36 = vector.extract_strided_slice %0 {offsets = [0, 0, 9], sizes = [4, 28, 16], strides = [1, 1, 1]} : vector<4x28x28xf32> to vector<4x28x16xf32>
    %cst_10 = arith.constant 0.0359943472 : f32
    %37 = vector.broadcast %cst_10 : f32 to vector<4x28x16xf32>
    %38 = arith.mulf %37, %36 : vector<4x28x16xf32>
    %39 = arith.addf %35, %38 : vector<4x28x16xf32>
    %40 = vector.extract_strided_slice %0 {offsets = [0, 0, 10], sizes = [4, 28, 16], strides = [1, 1, 1]} : vector<4x28x28xf32> to vector<4x28x16xf32>
    %cst_11 = arith.constant 0.0075974022 : f32
    %41 = vector.broadcast %cst_11 : f32 to vector<4x28x16xf32>
    %42 = arith.mulf %41, %40 : vector<4x28x16xf32>
    %43 = arith.addf %39, %42 : vector<4x28x16xf32>
    %44 = vector.extract_strided_slice %0 {offsets = [0, 0, 11], sizes = [4, 28, 16], strides = [1, 1, 1]} : vector<4x28x28xf32> to vector<4x28x16xf32>
    %cst_12 = arith.constant 0.00102819654 : f32
    %45 = vector.broadcast %cst_12 : f32 to vector<4x28x16xf32>
    %46 = arith.mulf %45, %44 : vector<4x28x16xf32>
    %47 = arith.addf %43, %46 : vector<4x28x16xf32>
    %48 = vector.extract_strided_slice %0 {offsets = [0, 0, 12], sizes = [4, 28, 16], strides = [1, 1, 1]} : vector<4x28x28xf32> to vector<4x28x16xf32>
    %cst_13 = arith.constant 8.92210664E-5 : f32
    %49 = vector.broadcast %cst_13 : f32 to vector<4x28x16xf32>
    %50 = arith.mulf %49, %48 : vector<4x28x16xf32>
    %51 = arith.addf %47, %50 : vector<4x28x16xf32>
    %52 = vector.extract_strided_slice %51 {offsets = [0, 0, 0], sizes = [4, 16, 16], strides = [1, 1, 1]} : vector<4x28x16xf32> to vector<4x16x16xf32>
    %cst_14 = arith.constant 8.92210664E-5 : f32
    %53 = vector.broadcast %cst_14 : f32 to vector<4x16x16xf32>
    %54 = arith.mulf %53, %52 : vector<4x16x16xf32>
    %55 = vector.extract_strided_slice %51 {offsets = [0, 1, 0], sizes = [4, 16, 16], strides = [1, 1, 1]} : vector<4x28x16xf32> to vector<4x16x16xf32>
    %cst_15 = arith.constant 0.00102819654 : f32
    %56 = vector.broadcast %cst_15 : f32 to vector<4x16x16xf32>
    %57 = arith.mulf %56, %55 : vector<4x16x16xf32>
    %58 = arith.addf %54, %57 : vector<4x16x16xf32>
    %59 = vector.extract_strided_slice %51 {offsets = [0, 2, 0], sizes = [4, 16, 16], strides = [1, 1, 1]} : vector<4x28x16xf32> to vector<4x16x16xf32>
    %cst_16 = arith.constant 0.0075974022 : f32
    %60 = vector.broadcast %cst_16 : f32 to vector<4x16x16xf32>
    %61 = arith.mulf %60, %59 : vector<4x16x16xf32>
    %62 = arith.addf %58, %61 : vector<4x16x16xf32>
    %63 = vector.extract_strided_slice %51 {offsets = [0, 3, 0], sizes = [4, 16, 16], strides = [1, 1, 1]} : vector<4x28x16xf32> to vector<4x16x16xf32>
    %cst_17 = arith.constant 0.0359943472 : f32
    %64 = vector.broadcast %cst_17 : f32 to vector<4x16x16xf32>
    %65 = arith.mulf %64, %63 : vector<4x16x16xf32>
    %66 = arith.addf %62, %65 : vector<4x16x16xf32>
    %67 = vector.extract_strided_slice %51 {offsets = [0, 4, 0], sizes = [4, 16, 16], strides = [1, 1, 1]} : vector<4x28x16xf32> to vector<4x16x16xf32>
    %cst_18 = arith.constant 0.109341174 : f32
    %68 = vector.broadcast %cst_18 : f32 to vector<4x16x16xf32>
    %69 = arith.mulf %68, %67 : vector<4x16x16xf32>
    %70 = arith.addf %66, %69 : vector<4x16x16xf32>
    %71 = vector.extract_strided_slice %51 {offsets = [0, 5, 0], sizes = [4, 16, 16], strides = [1, 1, 1]} : vector<4x28x16xf32> to vector<4x16x16xf32>
    %cst_19 = arith.constant 0.21296753 : f32
    %72 = vector.broadcast %cst_19 : f32 to vector<4x16x16xf32>
    %73 = arith.mulf %72, %71 : vector<4x16x16xf32>
    %74 = arith.addf %70, %73 : vector<4x16x16xf32>
    %75 = vector.extract_strided_slice %51 {offsets = [0, 6, 0], sizes = [4, 16, 16], strides = [1, 1, 1]} : vector<4x28x16xf32> to vector<4x16x16xf32>
    %cst_20 = arith.constant 0.26596427 : f32
    %76 = vector.broadcast %cst_20 : f32 to vector<4x16x16xf32>
    %77 = arith.mulf %76, %75 : vector<4x16x16xf32>
    %78 = arith.addf %74, %77 : vector<4x16x16xf32>
    %79 = vector.extract_strided_slice %51 {offsets = [0, 7, 0], sizes = [4, 16, 16], strides = [1, 1, 1]} : vector<4x28x16xf32> to vector<4x16x16xf32>
    %cst_21 = arith.constant 0.21296753 : f32
    %80 = vector.broadcast %cst_21 : f32 to vector<4x16x16xf32>
    %81 = arith.mulf %80, %79 : vector<4x16x16xf32>
    %82 = arith.addf %78, %81 : vector<4x16x16xf32>
    %83 = vector.extract_strided_slice %51 {offsets = [0, 8, 0], sizes = [4, 16, 16], strides = [1, 1, 1]} : vector<4x28x16xf32> to vector<4x16x16xf32>
    %cst_22 = arith.constant 0.109341174 : f32
    %84 = vector.broadcast %cst_22 : f32 to vector<4x16x16xf32>
    %85 = arith.mulf %84, %83 : vector<4x16x16xf32>
    %86 = arith.addf %82, %85 : vector<4x16x16xf32>
    %87 = vector.extract_strided_slice %51 {offsets = [0, 9, 0], sizes = [4, 16, 16], strides = [1, 1, 1]} : vector<4x28x16xf32> to vector<4x16x16xf32>
    %cst_23 = arith.constant 0.0359943472 : f32
    %88 = vector.broadcast %cst_23 : f32 to vector<4x16x16xf32>
    %89 = arith.mulf %88, %87 : vector<4x16x16xf32>
    %90 = arith.addf %86, %89 : vector<4x16x16xf32>
    %91 = vector.extract_strided_slice %51 {offsets = [0, 10, 0], sizes = [4, 16, 16], strides = [1, 1, 1]} : vector<4x28x16xf32> to vector<4x16x16xf32>
    %cst_24 = arith.constant 0.0075974022 : f32
    %92 = vector.broadcast %cst_24 : f32 to vector<4x16x16xf32>
    %93 = arith.mulf %92, %91 : vector<4x16x16xf32>
    %94 = arith.addf %90, %93 : vector<4x16x16xf32>
    %95 = vector.extract_strided_slice %51 {offsets = [0, 11, 0], sizes = [4, 16, 16], strides = [1, 1, 1]} : vector<4x28x16xf32> to vector<4x16x16xf32>
    %cst_25 = arith.constant 0.00102819654 : f32
    %96 = vector.broadcast %cst_25 : f32 to vector<4x16x16xf32>
    %97 = arith.mulf %96, %95 : vector<4x16x16xf32>
    %98 = arith.addf %94, %97 : vector<4x16x16xf32>
    %99 = vector.extract_strided_slice %51 {offsets = [0, 12, 0], sizes = [4, 16, 16], strides = [1, 1, 1]} : vector<4x28x16xf32> to vector<4x16x16xf32>
    %cst_26 = arith.constant 8.92210664E-5 : f32
    %100 = vector.broadcast %cst_26 : f32 to vector<4x16x16xf32>
    %101 = arith.mulf %100, %99 : vector<4x16x16xf32>
    %102 = arith.addf %98, %101 : vector<4x16x16xf32>
    %c0_27 = arith.constant 0 : index
    %c0_28 = arith.constant 0 : index
    %c0_29 = arith.constant 0 : index
    %103 = vector.load %arg2[%c0_27, %c0_28, %c0_29] : memref<4x16x16xf32, #tpu.memory_space<vmem>>, vector<4x16x16xf32>
    tpu.vector_store %arg2[%c0_27, %c0_28, %c0_29], %102 {strides = array<i32>} : memref<4x16x16xf32, #tpu.memory_space<vmem>>, vector<4x16x16xf32>,
    return
  }
  func.func @transform_0(%arg0: i32) -> (i32, i32, i32) {
    %c0_i32 = arith.constant 0 : i32
    %c0_i32_0 = arith.constant 0 : i32
    %c0_i32_1 = arith.constant 0 : i32
    return %arg0, %c0_i32, %c0_i32_0 : i32, i32, i32
  }
  func.func @transform_1(%arg0: i32) -> (i32, i32, i32) {
    %c0_i32 = arith.constant 0 : i32
    %c0_i32_0 = arith.constant 0 : i32
    %c0_i32_1 = arith.constant 0 : i32
    return %arg0, %c0_i32, %c0_i32_0 : i32, i32, i32
  }
}

</mosaic_0001>

<bundles_post_ra>
// kernel: tpu_custom_call.1
= control target key start
LH: loop header
LB: loop body
LE: loop exit
PB: predicated region body
PF: predicated region fallthrough
CT: control target
= control target key end

     0   :  { %6 = vsyncpa [#allocation3], 0  ;;  %s3485_s0 = inlined_call_operand.vmem [shape: f32[8,28,28], index: 0, kind: input, shape index: {}]   ;;  %s3486_s1 = inlined_call_operand.hbm [shape: f32[8,16,16], index: 1, kind: output, shape index: {}]  }
   0x1   :  { %8 = vsyncpa [#allocation3 + $0x1], 0  ;;  %s1966_s6 = smov 0   ;;  %s1968_s7 = smov 0  }
   0x2   :  { %s1970_s8 = smov 0   ;;  %s1972_s9 = smov 0  }
   0x3 LB: > { %s1987_s10 = sadd.s32 4294967295, %s1940_s9   ;;  %s1808_s11 = sadd.s32 4294967294, %s1940_s9   ;;  %s1940_s9 = sphi %s1972_s9, %s3818_s9   ;;  %s1936_s8 = sphi %s1970_s8, %s3817_s8   ;;  %s1932_s7 = sphi %s1968_s7, %s3816_s7   ;;  %s1928_s6 = sphi %s1966_s6, %s3815_s6  }
   0x4   : > { %s1991_s12 = sadd.s32 1, %s1940_s9   ;;  %s47_s13 = sadd.s32 1, %s1936_s8 }
   0x5   : > { %s44_s14 = ssub.s32 %s1940_s9, %s1991_s12  ;;  %p57_p0 = scmp.ne.s32.totalorder %s1936_s8, %s1932_s7 }
   0x6   : > { %p45_p1 = scmp.eq.s32.totalorder %s44_s14, 0  ;;  %p58_p2 = scmp.eq.s32.totalorder %s1987_s10, 1 }
   0x7   : > { %p63_p3 = scmp.ne.s32.totalorder %s1932_s7, %s1928_s6  ;;  %p64_p4 = scmp.eq.s32.totalorder %s1808_s11, 1 }
   0x8   : > { %s2002_s15 = scalar_select %p45_p1, %s1936_s8, %s47_s13  }
   0x9   : > { %p2004_p5 = por %p58_p2, %p57_p0  ;;  %p2008_p6 = por %p64_p4, %p63_p3 }
   0xa   : > { %p1811_p7 = scmp.ge.s32.totalorder %s1940_s9, 1  ;;  %p92_p8 = scmp.lt.s32.totalorder %s1940_s9, 3 }
   0xc   : > { %p93_p9 = pnand %p1811_p7, %p92_p8 }
   0xe   : > { %96 = sbr.rel (%p93_p9) target bundleno = 729 (0x2d9), region = 24 }
  0x13   : > { %s1813_s18 = sshll.u32 %s1987_s10, 2  ;;  %s1942_s23 = smov 127   ;;  %vm1161_vm0 = vcmask 1046528   ;;  %vm1222_vm1 = vcmask 1045504   ;;  %vm1283_vm2 = vcmask 1044480   ;;  %vm1344_vm3 = vcmask 1043456  }
  0x14   : > { %p114_p10 = scmp.lt.s32.totalorder %s1813_s18, 7  ;;  %s1943_s24 = smov 126   ;;  %vm1405_vm4 = vcmask 1042432   ;;  %vm1466_vm5 = vcmask 1041408   ;;  %vm1503_vm6 = vcmask 1040384   ;;  %vm1720_vm7 = vcmask 130048  }
  0x15   : > { %s1944_s25 = smov 125   ;;  %s1945_s26 = smov 124  }
  0x16   : > { %s3820_s18 = smov (!%p114_p10, %s1813_s18), 7  ;;  %s1946_s27 = smov 123  }
  0x17   : > { %s1822_s19 = sshll.u32 %s3820_s18, 5  ;;  %s1947_s28 = smov 122  }
  0x18   : > { %s2018_s22 = scalar_lea.vmem %s3485_s0, %s1822_s19  ;;  %s1948_s29 = smov 121  }
  0x19   : > { %v2021_v0 = vld [vmem:[%s2018_s22 + $0x20] sm:$0xff]  ;;  %v2024_v1 = vld [vmem:[%s2018_s22 + $0x10] sm:$0xff]  ;;  %v2045_v6 = vld [vmem:[%s2018_s22 + $0x28] sm:$0xff]  ;;  %s1949_s30 = smov 120   ;;  %s1950_s2 = smov 119  }
  0x1a   : > { %v2027_v2 = vld [vmem:[%s2018_s22] sm:$0xff]  ;;  %v2030_v3 = vmul.f32 0.0010281965, %v2021_v0  ;;  %v2033_v4 = vmul.f32 0.0010281965, %v2024_v1  ;;  %3582 = vst [vmem:[#allocation8_spill] sm:$0xff] %v2045_v6 }
  0x1b   : > { %v2036_v5 = vmul.f32 0.0010281965, %v2027_v2  ;;  %v2048_v7 = vld [vmem:[%s2018_s22 + $0x18] sm:$0xf]  ;;  %v2051_v8 = vld [vmem:[%s2018_s22 + $0x8] sm:$0xff]  ;;  %v2069_v12 = vld [vmem:[%s2018_s22 + $0x40] sm:$0xff] }
  0x1c   : > { %3579 = vst [vmem:[#allocation5_spill] sm:$0xff] %v2030_v3  ;;  %193 = vrot.lane.b32.xlu2 %v2030_v3, %s1942_s23  ;;  %189 = vrot.lane.b32.xlu1 %v2033_v4, %s1942_s23  ;;  %v2054_v9 = vmul.f32 0.0010281965, %v2045_v6  ;;  %v2057_v10 = vmul.f32 0.0010281965, %v2048_v7  ;;  %v2075_v14 = vld [vmem:[%s2018_s22 + $0x30] sm:$0xff] }
  0x1d   : > { %3580 = vst [vmem:[#allocation6_spill] sm:$0xff] %v2033_v4  ;;  %185 = vrot.lane.b32.xlu0 %v2036_v5, %s1942_s23  ;;  %v2060_v11 = vmul.f32 0.0010281965, %v2051_v8  ;;  %v2072_v13 = vld [vmem:[%s2018_s22 + $0x38] sm:$0xf]  ;;  %v2096_v19 = vld [vmem:[%s2018_s22 + $0x50] sm:$0xff] }
  0x1e   : > { %3581 = vst [vmem:[#allocation7_spill] sm:$0xff] %v2036_v5  ;;  %v2078_v15 = vmul.f32 0.0010281965, %v2069_v12  ;;  %v2081_v16 = vmul.f32 0.0010281965, %v2072_v13  ;;  %v2099_v20 = vld [vmem:[%s2018_s22 + $0x48] sm:$0xff] }
  0x1f   : > { %3583 = vst [vmem:[#allocation9_spill] sm:$0xff] %v2054_v9  ;;  %v2084_v17 = vmul.f32 0.0010281965, %v2075_v14  ;;  %v2093_v18 = vld [vmem:[%s2018_s22 + $0x58] sm:$0xf]  ;;  %v2117_v24 = vld [vmem:[%s2018_s22 + $0x70] sm:$0xff] }
  0x20   : > { %3584 = vst [vmem:[#allocation10_spill] sm:$0xff] %v2057_v10  ;;  %v2102_v21 = vmul.f32 0.0010281965, %v2093_v18  ;;  %v2105_v22 = vmul.f32 0.0010281965, %v2096_v19  ;;  %v2120_v25 = vld [vmem:[%s2018_s22 + $0x68] sm:$0xff] }
  0x21   : > { %3585 = vst [vmem:[#allocation11_spill] sm:$0xff] %v2060_v11  ;;  %v2108_v23 = vmul.f32 0.0010281965, %v2099_v20  ;;  %v2123_v26 = vld [vmem:[%s2018_s22 + $0x60] sm:$0xff]  ;;  %v2126_v27 = vmul.f32 0.0010281965, %v2117_v24 }
  0x22   : > { %3586 = vst [vmem:[#allocation12_spill] sm:$0xff] %v2069_v12  ;;  %v2129_v28 = vmul.f32 0.0010281965, %v2120_v25  ;;  %v2132_v29 = vmul.f32 0.0010281965, %v2123_v26  ;;  %s1951_s3 = smov 118  }
  0x23   : > { %3587 = vst [vmem:[#allocation13_spill] sm:$0xff] %v2078_v15  ;;  %v2141_v30 = vld [vmem:[%s2018_s22 + $0x78] sm:$0xf]  ;;  %v2144_v31 = vmul.f32 0.007597402, %v2051_v8  ;;  %s1952_s4 = smov 117  }
  0x24   : > { %195 = vrot.lane.b32.xlu2 %v2054_v9, %s1942_s23  ;;  %191 = vrot.lane.b32.xlu1 %v2057_v10, %s1942_s23  ;;  %3588 = vst [vmem:[#allocation14_spill] sm:$0xff] %v2081_v16  ;;  %v2147_v32 = vmul.f32 0.007597402, %v2027_v2  ;;  %v2150_v33 = vmul.f32 0.0010281965, %v2141_v30  ;;  %s1953_s5 = smov 116  }
  0x25   : > { %187 = vrot.lane.b32.xlu0 %v2060_v11, %s1942_s23  ;;  %3589 = vst [vmem:[#allocation15_spill] sm:$0xff] %v2084_v17  ;;  %v2159_v34 = vmul.f32 0.007597402, %v2021_v0  ;;  %v2162_v35 = vmul.f32 0.007597402, %v2048_v7  ;;  %s110_s11 = sand.u32 1, %s1932_s7  }
  0x26   : > { %3590 = vst [vmem:[#allocation16_spill] sm:$0xff] %v2093_v18  ;;  %v2165_v36 = vmul.f32 0.007597402, %v2024_v1  ;;  %v2174_v37 = vmul.f32 0.007597402, %v2072_v13  ;;  %s1812_s13 = sshll.u32 %s110_s11, 6 }
  0x27   : > { %3591 = vst [vmem:[#allocation17_spill] sm:$0xff] %v2099_v20  ;;  %v2177_v38 = vmul.f32 0.007597402, %v2075_v14  ;;  %v2180_v39 = vmul.f32 0.007597402, %v2045_v6  ;;  %s3213_s14 = scalar_lea.vmem [#allocation2], %s1812_s13 }
  0x28   : > { %3592 = vst [vmem:[#allocation18_spill] sm:$0xff] %v2102_v21  ;;  %v2189_v40 = vmul.f32 0.007597402, %v2096_v19  ;;  %v2192_v41 = vmul.f32 0.007597402, %v2099_v20  ;;  %s1824_s18 = sshll.u32 %s1987_s10, 6 }
  0x29   : > { %3593 = vst [vmem:[#allocation19_spill] sm:$0xff] %v2105_v22  ;;  %v2195_v42 = vmul.f32 0.007597402, %v2069_v12  ;;  %v2204_v43 = vmul.f32 0.007597402, %v2120_v25  ;;  %s1742_s21 = scalar_lea.hbm %s3486_s1, %s1824_s18  ;;  %s1743_s22 = sshll.u32 %s3213_s14, 4  ;;  %s1744_s22 = int_to_ptr.vmem [resolvable:$true] %s1743_s22 }
  0x2a   : > { %3594 = vst [vmem:[#allocation20_spill] sm:$0xff] %v2108_v23  ;;  %v2207_v44 = vmul.f32 0.007597402, %v2123_v26  ;;  %v2210_v45 = vmul.f32 0.007597402, %v2093_v18  ;;  %s1730_s10 = scalar_lea.sflag [#allocation3], %s110_s11 }
  0x2b   : > { %3595 = vst [vmem:[#allocation21_spill] sm:$0xff] %v2123_v26  ;;  %v2219_v46 = vmul.f32 0.035994347, %v2027_v2  ;;  %v2222_v47 = vmul.f32 0.007597402, %v2141_v30 }
  0x2c   : > { %201 = vrot.lane.b32.xlu2 %v2078_v15, %s1942_s23  ;;  %199 = vrot.lane.b32.xlu1 %v2081_v16, %s1942_s23  ;;  %3596 = vst [vmem:[#allocation22_spill] sm:$0xff] %v2126_v27  ;;  %v2225_v48 = vmul.f32 0.007597402, %v2117_v24  ;;  %v2234_v49 = vmul.f32 0.035994347, %v2048_v7 }
  0x2d   : > { %197 = vrot.lane.b32.xlu0 %v2084_v17, %s1942_s23  ;;  %3597 = vst [vmem:[#allocation23_spill] sm:$0xff] %v2129_v28  ;;  %v2237_v50 = vmul.f32 0.035994347, %v2024_v1  ;;  %v2240_v51 = vmul.f32 0.035994347, %v2051_v8 }
  0x2e   : > { %3598 = vst [vmem:[#allocation24_spill] sm:$0xff] %v2132_v29  ;;  %v2251_v53 = vmul.f32 0.035994347, %v2075_v14  ;;  %v2254_v54 = vmul.f32 0.035994347, %v2045_v6 }
  0x2f   : > { %3599 = vst [vmem:[#allocation25_spill] sm:$0xff] %v2144_v31  ;;  %v2257_v55 = vmul.f32 0.035994347, %v2021_v0  ;;  %v2268_v57 = vmul.f32 0.035994347, %v2099_v20 }
  0x30   : > { %3600 = vst [vmem:[#allocation26_spill] sm:$0xff] %v2147_v32  ;;  %v2271_v58 = vmul.f32 0.035994347, %v2069_v12  ;;  %v2274_v59 = vmul.f32 0.035994347, %v2072_v13 }
  0x31   : > { %3601 = vst [vmem:[#allocation27_spill] sm:$0xff] %v2150_v33  ;;  %v2285_v61 = vmul.f32 0.035994347, %v2123_v26  ;;  %v2288_v62 = vmul.f32 0.035994347, %v2093_v18 }
  0x32   : > { %3602 = vst [vmem:[#allocation28_spill] sm:$0xff] %v2159_v34  ;;  %v2291_v63 = vmul.f32 0.035994347, %v2096_v19  ;;  %v2312_v15 = vmul.f32 0.035994347, %v2120_v25 }
  0x33   : > { %3603 = vst [vmem:[#allocation29_spill] sm:$0xff] %v2162_v35  ;;  %v2327_v17 = vmul.f32 0.109341174, %v2024_v1  ;;  %v2330_v16 = vmul.f32 0.109341174, %v2051_v8 }
  0x34   : > { %207 = vrot.lane.b32.xlu2 %v2102_v21, %s1942_s23  ;;  %205 = vrot.lane.b32.xlu1 %v2105_v22, %s1942_s23  ;;  %3604 = vst [vmem:[#allocation30_spill] sm:$0xff] %v2165_v36  ;;  %v2333_v4 = vmul.f32 0.109341174, %v2027_v2  ;;  %v2348_v5 = vmul.f32 0.109341174, %v2045_v6 }
  0x35   : > { %203 = vrot.lane.b32.xlu0 %v2108_v23, %s1942_s23  ;;  %3605 = vst [vmem:[#allocation31_spill] sm:$0xff] %v2174_v37  ;;  %v2351_v11 = vmul.f32 0.109341174, %v2021_v0 }
  0x36   : > { %3606 = vst [vmem:[#allocation32_spill] sm:$0xff] %v2177_v38 }
  0x37   : > { %3607 = vst [vmem:[#allocation33_spill] sm:$0xff] %v2180_v39 }
  0x38   : > { %3608 = vst [vmem:[#allocation34_spill] sm:$0xff] %v2189_v40 }
  0x39   : > { %3609 = vst [vmem:[#allocation35_spill] sm:$0xff] %v2192_v41 }
  0x3a   : > { %3610 = vst [vmem:[#allocation36_spill] sm:$0xff] %v2195_v42 }
  0x3b   : > { %3611 = vst [vmem:[#allocation37_spill] sm:$0xff] %v2204_v43 }
  0x3c   : > { %213 = vrot.lane.b32.xlu2 %v2126_v27, %s1942_s23  ;;  %211 = vrot.lane.b32.xlu1 %v2129_v28, %s1942_s23  ;;  %3612 = vst [vmem:[#allocation38_spill] sm:$0xff] %v2207_v44  ;;  %v2306_v28 = vmul.f32 0.035994347, %v2141_v30  ;;  %v2309_v27 = vmul.f32 0.035994347, %v2117_v24 }
  0x3d   : > { %209 = vrot.lane.b32.xlu0 %v2132_v29, %s1942_s23  ;;  %3613 = vst [vmem:[#allocation39_spill] sm:$0xff] %v2210_v45 }
  0x3e   : > { %3614 = vst [vmem:[#allocation40_spill] sm:$0xff] %v2219_v46 }
  0x3f   : > { %3615 = vst [vmem:[#allocation41_spill] sm:$0xff] %v2222_v47 }
  0x40   : > { %3616 = vst [vmem:[#allocation42_spill] sm:$0xff] %v2225_v48 }
  0x41   : > { %3617 = vst [vmem:[#allocation43_spill] sm:$0xff] %v2234_v49 }
  0x42   : > { %3618 = vst [vmem:[#allocation44_spill] sm:$0xff] %v2237_v50 }
  0x43   : > { %3619 = vst [vmem:[#allocation45_spill] sm:$0xff] %v2240_v51 }
  0x44   : > { %283 = vrot.lane.b32.xlu2 %v2144_v31, %s1943_s24  ;;  %281 = vrot.lane.b32.xlu1 %v2147_v32, %s1943_s24  ;;  %3620 = vst [vmem:[#allocation46_spill] sm:$0xff] %v2251_v53  ;;  %v2396_v32 = vmul.f32 0.109341174, %v2099_v20 }
  0x45   : > { %215 = vrot.lane.b32.xlu0 %v2150_v33, %s1942_s23  ;;  %3621 = vst [vmem:[#allocation47_spill] sm:$0xff] %v2254_v54  ;;  %s1745_s23 = sshll.u32 %s1742_s21, 4  ;;  %s1746_s23 = int_to_ptr.hbm [resolvable:$true] %s1745_s23 }
  0x46   : > { %3622 = vst [vmem:[#allocation48_spill] sm:$0xff] %v2257_v55 }
  0x47   : > { %3624 = vst [vmem:[#allocation50_spill] sm:$0xff] %v2268_v57 }
  0x48   : > { %3625 = vst [vmem:[#allocation51_spill] sm:$0xff] %v2271_v58 }
  0x49   : > { %3626 = vst [vmem:[#allocation52_spill] sm:$0xff] %v2274_v59 }
  0x4a   : > { %3628 = vst [vmem:[#allocation54_spill] sm:$0xff] %v2285_v61 }
  0x4b   : > { %3629 = vst [vmem:[#allocation55_spill] sm:$0xff] %v2288_v62 }
  0x4c   : > { %289 = vrot.lane.b32.xlu2 %v2159_v34, %s1943_s24  ;;  %287 = vrot.lane.b32.xlu1 %v2162_v35, %s1943_s24  ;;  %3630 = vst [vmem:[#allocation56_spill] sm:$0xff] %v2291_v63  ;;  %v2390_v34 = vmul.f32 0.109341174, %v2093_v18 }
  0x4d   : > { %285 = vrot.lane.b32.xlu0 %v2165_v36, %s1943_s24  ;;  %3632 = vst [vmem:[#allocation58_spill] sm:$0xff] %v2306_v28 }
  0x4e   : > { %3633 = vst [vmem:[#allocation59_spill] sm:$0xff] %v2309_v27 }
  0x4f   : > { %3634 = vst [vmem:[#allocation60_spill] sm:$0xff] %v2312_v15 }
  0x50   : > { %3635 = vst [vmem:[#allocation61_spill] sm:$0xff] %v2327_v17 }
  0x51   : > { %3636 = vst [vmem:[#allocation62_spill] sm:$0xff] %v2330_v16 }
  0x52   : > { %3637 = vst [vmem:[#allocation63_spill] sm:$0xff] %v2333_v4 }
  0x53   : > { %3639 = vst [vmem:[#allocation65_spill] sm:$0xff] %v2348_v5 }
  0x54   : > { %295 = vrot.lane.b32.xlu2 %v2174_v37, %s1943_s24  ;;  %293 = vrot.lane.b32.xlu1 %v2177_v38, %s1943_s24  ;;  %3640 = vst [vmem:[#allocation66_spill] sm:$0xff] %v2351_v11  ;;  %v2375_v38 = vmul.f32 0.109341174, %v2075_v14 }
  0x55   : > { %291 = vrot.lane.b32.xlu0 %v2180_v39, %s1943_s24  ;;  %3647 = vst [vmem:[#allocation73_spill] sm:$0xff] %v2390_v34  ;;  %v2393_v39 = vmul.f32 0.109341174, %v2096_v19 }
  0x56   : > { %3645 = vst [vmem:[#allocation71_spill] sm:$0xff] %v2375_v38 }
  0x57   : > { %3648 = vst [vmem:[#allocation74_spill] sm:$0xff] %v2393_v39 }
  0x58   : > { %3649 = vst [vmem:[#allocation75_spill] sm:$0xff] %v2396_v32 }
  0x5c   : > { %301 = vrot.lane.b32.xlu2 %v2189_v40, %s1943_s24  ;;  %299 = vrot.lane.b32.xlu1 %v2192_v41, %s1943_s24  ;;  %v2369_v40 = vmul.f32 0.109341174, %v2069_v12 }
  0x5d   : > { %297 = vrot.lane.b32.xlu0 %v2195_v42, %s1943_s24 }
  0x5e   : > { %3643 = vst [vmem:[#allocation69_spill] sm:$0xff] %v2369_v40 }
  0x64   : > { %307 = vrot.lane.b32.xlu2 %v2204_v43, %s1943_s24  ;;  %305 = vrot.lane.b32.xlu1 %v2207_v44, %s1943_s24  ;;  %v2354_v44 = vmul.f32 0.109341174, %v2048_v7 }
  0x65   : > { %303 = vrot.lane.b32.xlu0 %v2210_v45, %s1943_s24  ;;  %v2372_v45 = vmul.f32 0.109341174, %v2072_v13 }
  0x66   : > { %3641 = vst [vmem:[#allocation67_spill] sm:$0xff] %v2354_v44 }
  0x67   : > { %3644 = vst [vmem:[#allocation70_spill] sm:$0xff] %v2372_v45 }
  0x6c   : > { %377 = vrot.lane.b32.xlu2 %v2219_v46, %s1944_s25  ;;  %311 = vrot.lane.b32.xlu1 %v2222_v47, %s1943_s24 }
  0x6d   : > { %309 = vrot.lane.b32.xlu0 %v2225_v48, %s1943_s24  ;;  %s1892_s24 = sshra.s32 %s1746_s23, 4  ;;  %s1893_s24 = int_to_ptr.hbm [resolvable:$true] %s1892_s24 }
  0x6e   : > { %p1899_p0 = scmp.lt.s32.totalorder %s1893_s24, %s3486_s1 }
  0x74   : > { %383 = vrot.lane.b32.xlu2 %v2234_v49, %s1944_s25  ;;  %381 = vrot.lane.b32.xlu1 %v2237_v50, %s1944_s25  ;;  %v2453_v50 = vmul.f32 0.21296753, %v2021_v0  ;;  %v2456_v49 = vmul.f32 0.21296753, %v2048_v7 }
  0x75   : > { %379 = vrot.lane.b32.xlu0 %v2240_v51, %s1944_s25 }
  0x76   : > { %v2248_v52 = vpop.permute.xlu2 %193 }
  0x7c   : > { %389 = vrot.lane.b32.xlu2 %v2251_v53, %s1944_s25  ;;  %387 = vrot.lane.b32.xlu1 %v2254_v54, %s1944_s25 }
  0x7d   : > { %385 = vrot.lane.b32.xlu0 %v2257_v55, %s1944_s25  ;;  %v2438_v55 = vmul.f32 0.109341174, %v2141_v30 }
  0x7e   : > { %v2265_v56 = vpop.permute.xlu2 %195 }
  0x7f   : > { %3623 = vst [vmem:[#allocation49_spill] sm:$0xff] %v2265_v56  ;;  %v634_v56 = vmul.f32 0.26596427, %v2051_v8 }
  0x80   : > { %3653 = vst [vmem:[#allocation79_spill] sm:$0xff] %v2438_v55 }
  0x84   : > { %395 = vrot.lane.b32.xlu2 %v2268_v57, %s1944_s25  ;;  %393 = vrot.lane.b32.xlu1 %v2271_v58, %s1944_s25  ;;  %v2432_v58 = vmul.f32 0.21296753, %v2051_v8  ;;  %v2435_v57 = vmul.f32 0.21296753, %v2027_v2 }
  0x85   : > { %391 = vrot.lane.b32.xlu0 %v2274_v59, %s1944_s25 }
  0x86   : > { %v2282_v60 = vpop.permute.xlu2 %201 }
  0x87   : > { %3627 = vst [vmem:[#allocation53_spill] sm:$0xff] %v2282_v60  ;;  %v633_v60 = vmul.f32 0.26596427, %v2027_v2 }
  0x8c   : > { %401 = vrot.lane.b32.xlu2 %v2285_v61, %s1944_s25  ;;  %399 = vrot.lane.b32.xlu1 %v2288_v62, %s1944_s25 }
  0x8d   : > { %397 = vrot.lane.b32.xlu0 %v2291_v63, %s1944_s25  ;;  %v2417_v63 = vmul.f32 0.109341174, %v2123_v26 }
  0x8e   : > { %v2299_v21 = vpop.permute.xlu2 %207  ;;  %v2301_v33 = vpop.permute.xlu1 %189 }
  0x8f   : > { %3631 = vst [vmem:[#allocation57_spill] sm:$0xff] %v2299_v21  ;;  %v2303_v29 = vpop.permute.xlu0 %185  ;;  %v2501_v21 = vmul.f32 0.21296753, %v2069_v12 }
  0x90   : > { %3652 = vst [vmem:[#allocation78_spill] sm:$0xff] %v2417_v63 }
  0x94   : > { %407 = vrot.lane.b32.xlu2 %v2306_v28, %s1944_s25  ;;  %405 = vrot.lane.b32.xlu1 %v2309_v27, %s1944_s25  ;;  %v2411_v27 = vmul.f32 0.109341174, %v2117_v24  ;;  %v2414_v28 = vmul.f32 0.109341174, %v2120_v25 }
  0x95   : > { %403 = vrot.lane.b32.xlu0 %v2312_v15, %s1944_s25  ;;  %s1894_s25 = scalar_lea.hbm %s1893_s24, 64 }
  0x96   : > { %v2320_v23 = vpop.permute.xlu2 %213  ;;  %v2322_v22 = vpop.permute.xlu1 %191  ;;  %3650 = vst [vmem:[#allocation76_spill] sm:$0xff] %v2411_v27  ;;  %p1895_p11 = scmp.ne.s32.totalorder %s1893_s24, %s1894_s25 }
  0x97   : > { %v2324_v9 = vpop.permute.xlu0 %187  ;;  %3651 = vst [vmem:[#allocation77_spill] sm:$0xff] %v2414_v28 }
  0x98   : > { %p1896_p12 = pnand %p1895_p11, %p2004_p5 }
  0x9a   : > { %p1897_p13 = pneg %p1896_p12 }
  0x9c   : > { %477 = vrot.lane.b32.xlu2 %v2327_v17, %s1945_s26  ;;  %475 = vrot.lane.b32.xlu1 %v2330_v16, %s1945_s26  ;;  %v2514_v17 = vmul.f32 0.21296753, %v2120_v25 }
  0x9d   : > { %473 = vrot.lane.b32.xlu0 %v2333_v4, %s1945_s26  ;;  %v2539_v4 = vmul.f32 0.21296753, %v2117_v24 }
  0x9e   : > { %v2341_v10 = vpop.permute.xlu1 %199  ;;  %v2343_v3 = vpop.permute.xlu2 %283  ;;  %3663 = vst [vmem:[#allocation89_spill] sm:$0xff] %v2514_v17 }
  0x9f   : > { %v2345_v47 = vpop.permute.xlu0 %197  ;;  %3668 = vst [vmem:[#allocation94_spill] sm:$0xff] %v2539_v4 }
  0xa0   : > { %3638 = vst [vmem:[#allocation64_spill] sm:$0xff] %v2345_v47 }
  0xa4   : > { %483 = vrot.lane.b32.xlu2 %v2348_v5, %s1945_s26  ;;  %481 = vrot.lane.b32.xlu1 %v2351_v11, %s1945_s26  ;;  %v2520_v11 = vmul.f32 0.21296753, %v2093_v18 }
  0xa5   : > { %479 = vrot.lane.b32.xlu0 %v2354_v44, %s1945_s26  ;;  %v2517_v44 = vmul.f32 0.21296753, %v2123_v26 }
  0xa6   : > { %v2362_v43 = vpop.permute.xlu1 %205  ;;  %v2364_v48 = vpop.permute.xlu2 %289 }
  0xa7   : > { %v2366_v41 = vpop.permute.xlu0 %203  ;;  %3664 = vst [vmem:[#allocation90_spill] sm:$0xff] %v2517_v44 }
  0xa8   : > { %3642 = vst [vmem:[#allocation68_spill] sm:$0xff] %v2366_v41  ;;  %v2536_v41 = vmul.f32 0.21296753, %v2141_v30 }
  0xaa   : > { %3667 = vst [vmem:[#allocation93_spill] sm:$0xff] %v2536_v41 }
  0xac   : > { %489 = vrot.lane.b32.xlu2 %v2369_v40, %s1945_s26  ;;  %487 = vrot.lane.b32.xlu1 %v2372_v45, %s1945_s26  ;;  %v2480_v40 = vmul.f32 0.21296753, %v2045_v6  ;;  %v2498_v45 = vmul.f32 0.21296753, %v2099_v20 }
  0xad   : > { %485 = vrot.lane.b32.xlu0 %v2375_v38, %s1945_s26  ;;  %v2495_v38 = vmul.f32 0.21296753, %v2096_v19 }
  0xae   : > { %v2383_v37 = vpop.permute.xlu1 %211  ;;  %v2385_v42 = vpop.permute.xlu2 %295 }
  0xaf   : > { %v2387_v35 = vpop.permute.xlu0 %209 }
  0xb0   : > { %3646 = vst [vmem:[#allocation72_spill] sm:$0xff] %v2387_v35 }
  0xb4   : > { %495 = vrot.lane.b32.xlu2 %v2390_v34, %s1945_s26  ;;  %493 = vrot.lane.b32.xlu1 %v2393_v39, %s1945_s26 }
  0xb5   : > { %491 = vrot.lane.b32.xlu0 %v2396_v32, %s1945_s26 }
  0xb6   : > { %v2404_v31 = vpop.permute.xlu2 %301  ;;  %v2406_v36 = vpop.permute.xlu1 %281 }
  0xb7   : > { %v2408_v15 = vpop.permute.xlu0 %215 }
  0xbc   : > { %501 = vrot.lane.b32.xlu2 %v2411_v27, %s1945_s26  ;;  %499 = vrot.lane.b32.xlu1 %v2414_v28, %s1945_s26  ;;  %v2459_v27 = vmul.f32 0.21296753, %v2024_v1  ;;  %v2477_v28 = vmul.f32 0.21296753, %v2075_v14 }
  0xbd   : > { %497 = vrot.lane.b32.xlu0 %v2417_v63, %s1945_s26  ;;  %v2474_v63 = vmul.f32 0.21296753, %v2072_v13 }
  0xbe   : > { %v2425_v62 = vpop.permute.xlu2 %307  ;;  %v2427_v61 = vpop.permute.xlu1 %287 }
  0xbf   : > { %v2429_v59 = vpop.permute.xlu0 %285 }
  0xc4   : > { %571 = vrot.lane.b32.xlu2 %v2432_v58, %s1946_s27  ;;  %569 = vrot.lane.b32.xlu1 %v2435_v57, %s1946_s27 }
  0xc5   : > { %503 = vrot.lane.b32.xlu0 %v2438_v55, %s1945_s26 }
  0xc6   : > { %v2446_v54 = vpop.permute.xlu2 %377  ;;  %v2448_v53 = vpop.permute.xlu1 %293 }
  0xc7   : > { %3654 = vst [vmem:[#allocation80_spill] sm:$0xff] %v2448_v53  ;;  %v2450_v51 = vpop.permute.xlu0 %291  ;;  %v635_v53 = vmul.f32 0.26596427, %v2024_v1 }
  0xc8   : > { %3655 = vst [vmem:[#allocation81_spill] sm:$0xff] %v2450_v51  ;;  %v636_v51 = vmul.f32 0.26596427, %v2048_v7 }
  0xcc   : > { %577 = vrot.lane.b32.xlu2 %v2453_v50, %s1946_s27  ;;  %575 = vrot.lane.b32.xlu1 %v2456_v49, %s1946_s27 }
  0xcd   : > { %573 = vrot.lane.b32.xlu0 %v2459_v27, %s1946_s27 }
  0xce   : > { %v2467_v55 = vpop.permute.xlu2 %383  ;;  %v2469_v46 = vpop.permute.xlu1 %299 }
  0xcf   : > { %3656 = vst [vmem:[#allocation82_spill] sm:$0xff] %v2467_v55  ;;  %v2471_v34 = vpop.permute.xlu0 %297 }
  0xd0   : > { %3657 = vst [vmem:[#allocation83_spill] sm:$0xff] %v2469_v46 }
  0xd1   : > { %3658 = vst [vmem:[#allocation84_spill] sm:$0xff] %v2471_v34 }
  0xd4   : > { %583 = vrot.lane.b32.xlu2 %v2474_v63, %s1946_s27  ;;  %581 = vrot.lane.b32.xlu1 %v2477_v28, %s1946_s27 }
  0xd5   : > { %579 = vrot.lane.b32.xlu0 %v2480_v40, %s1946_s27 }
  0xd6   : > { %v2488_v32 = vpop.permute.xlu2 %389  ;;  %v2490_v39 = vpop.permute.xlu1 %305 }
  0xd7   : > { %3659 = vst [vmem:[#allocation85_spill] sm:$0xff] %v2488_v32  ;;  %v2492_v5 = vpop.permute.xlu0 %303 }
  0xd8   : > { %3660 = vst [vmem:[#allocation86_spill] sm:$0xff] %v2490_v39 }
  0xd9   : > { %3661 = vst [vmem:[#allocation87_spill] sm:$0xff] %v2492_v5 }
  0xdc   : > { %589 = vrot.lane.b32.xlu2 %v2495_v38, %s1946_s27  ;;  %587 = vrot.lane.b32.xlu1 %v2498_v45, %s1946_s27 }
  0xdd   : > { %585 = vrot.lane.b32.xlu0 %v2501_v21, %s1946_s27 }
  0xde   : > { %v2509_v39 = vpop.permute.xlu2 %395  ;;  %v2511_v5 = vpop.permute.xlu1 %311 }
  0xdf   : > { %3662 = vst [vmem:[#allocation88_spill] sm:$0xff] %v2509_v39  ;;  %v310_v35 = vpop.permute.xlu0 %309 }
  0xe4   : > { %595 = vrot.lane.b32.xlu2 %v2514_v17, %s1946_s27  ;;  %593 = vrot.lane.b32.xlu1 %v2517_v44, %s1946_s27  ;;  %v638_v44 = vmul.f32 0.26596427, %v2045_v6  ;;  %v637_v17 = vmul.f32 0.26596427, %v2021_v0 }
  0xe5   : > { %591 = vrot.lane.b32.xlu0 %v2520_v11, %s1946_s27 }
  0xe6   : > { %v2528_v39 = vpop.permute.xlu2 %401  ;;  %v2530_v34 = vpop.permute.xlu1 %381 }
  0xe7   : > { %3665 = vst [vmem:[#allocation91_spill] sm:$0xff] %v2528_v39  ;;  %v2532_v46 = vpop.permute.xlu0 %379 }
  0xe8   : > { %3666 = vst [vmem:[#allocation92_spill] sm:$0xff] %v2530_v34 }
  0xec   : > { %665 = vrot.lane.b32.xlu2 %v633_v60, %s1947_s28  ;;  %599 = vrot.lane.b32.xlu1 %v2536_v41, %s1946_s27 }
  0xed   : > { %597 = vrot.lane.b32.xlu0 %v2539_v4, %s1946_s27  ;;  %v640_v4 = vmul.f32 0.26596427, %v2072_v13 }
  0xee   : > { %v2546_v39 = vpop.permute.xlu2 %407  ;;  %v2548_v16 = vpop.permute.xlu1 %387 }
  0xef   : > { %3669 = vst [vmem:[#allocation95_spill] sm:$0xff] %v2548_v16  ;;  %v2550_v32 = vpop.permute.xlu0 %385  ;;  %v639_v16 = vmul.f32 0.26596427, %v2075_v14 }
  0xf4   : > { %671 = vrot.lane.b32.xlu2 %v636_v51, %s1947_s28  ;;  %669 = vrot.lane.b32.xlu1 %v635_v53, %s1947_s28 }
  0xf5   : > { %667 = vrot.lane.b32.xlu0 %v634_v56, %s1947_s28 }
  0xf6   : > { %v2558_v60 = vpop.permute.xlu2 %477  ;;  %v2560_v41 = vpop.permute.xlu1 %393 }
  0xf7   : > { %3670 = vst [vmem:[#allocation96_spill] sm:$0xff] %v2558_v60  ;;  %v2562_v47 = vpop.permute.xlu0 %391  ;;  %v641_v60 = vmul.f32 0.26596427, %v2069_v12 }
  0xf8   : > { %3671 = vst [vmem:[#allocation97_spill] sm:$0xff] %v2560_v41  ;;  %v642_v41 = vmul.f32 0.26596427, %v2099_v20  ;;  %v643_v20 = vmul.f32 0.26596427, %v2096_v19 }
  0xfc   : > { %677 = vrot.lane.b32.xlu2 %v639_v16, %s1947_s28  ;;  %675 = vrot.lane.b32.xlu1 %v638_v44, %s1947_s28 }
  0xfd   : > { %673 = vrot.lane.b32.xlu0 %v637_v17, %s1947_s28 }
  0xfe   : > { %v2570_v51 = vpop.permute.xlu2 %483  ;;  %v2572_v53 = vpop.permute.xlu1 %399 }
  0xff   : > { %3672 = vst [vmem:[#allocation98_spill] sm:$0xff] %v2570_v51  ;;  %v2574_v56 = vpop.permute.xlu0 %397  ;;  %v644_v51 = vmul.f32 0.26596427, %v2093_v18  ;;  %v647_v18 = vmul.f32 0.26596427, %v2117_v24 }
 0x100   : > { %3673 = vst [vmem:[#allocation99_spill] sm:$0xff] %v2572_v53  ;;  %v645_v53 = vmul.f32 0.26596427, %v2123_v26  ;;  %v648_v26 = vmul.f32 0.26596427, %v2141_v30 }
 0x104   : > { %683 = vrot.lane.b32.xlu2 %v642_v41, %s1947_s28  ;;  %681 = vrot.lane.b32.xlu1 %v641_v60, %s1947_s28  ;;  %v2590_v41 = vmul.f32 8.922107e-05, %v2117_v24 }
 0x105   : > { %679 = vrot.lane.b32.xlu0 %v640_v4, %s1947_s28 }
 0x106   : > { %v2582_v16 = vpop.permute.xlu2 %489  ;;  %v406_v17 = vpop.permute.xlu1 %405  ;;  %v247_v12 = vadd.f32 %v2320_v23, %v2590_v41 }
 0x107   : > { %3674 = vst [vmem:[#allocation100_spill] sm:$0xff] %v2582_v16  ;;  %v404_v44 = vpop.permute.xlu0 %403 }
 0x108   : > { %v343_v34 = vadd.f32 %v310_v35, %v247_v12  ;;  %v2616_v12 = vmul.f32 8.922107e-05, %v2021_v0 }
 0x10c   : > { %689 = vrot.lane.b32.xlu2 %v645_v53, %s1947_s28  ;;  %687 = vrot.lane.b32.xlu1 %v644_v51, %s1947_s28  ;;  %v646_v53 = vmul.f32 0.26596427, %v2120_v25  ;;  %v2603_v51 = vmul.f32 8.922107e-05, %v2051_v8 }
 0x10d   : > { %685 = vrot.lane.b32.xlu0 %v643_v20, %s1947_s28  ;;  %v439_v20 = vadd.f32 %v406_v17, %v343_v34 }
 0x10e   : > { %v2593_v4 = vpop.permute.xlu2 %495  ;;  %v476_v60 = vpop.permute.xlu1 %475  ;;  %v234_v24 = vadd.f32 %v2324_v9, %v2603_v51 }
 0x10f   : > { %3675 = vst [vmem:[#allocation101_spill] sm:$0xff] %v2593_v4  ;;  %v2595_v16 = vpop.permute.xlu0 %473 }
 0x110   : > { %v330_v8 = vadd.f32 %v2343_v3, %v234_v24  ;;  %v237_v3 = vadd.f32 %v2248_v52, %v2616_v12 }
 0x114   : > { %695 = vrot.lane.b32.xlu2 %v648_v26, %s1947_s28  ;;  %693 = vrot.lane.b32.xlu1 %v647_v18, %s1947_s28  ;;  %v426_v26 = vadd.f32 %v2532_v46, %v330_v8  ;;  %v333_v46 = vadd.f32 %v2364_v48, %v237_v3  ;;  %v3678_v3 = vld [vmem:[#allocation92_spill] sm:$0xff] }
 0x115   : > { %691 = vrot.lane.b32.xlu0 %v646_v53, %s1947_s28  ;;  %s1898_s28 = scalar_lea.hbm %s3486_s1, 128 }
 0x116   : > { %v502_v4 = vpop.permute.xlu2 %501  ;;  %v482_v6 = vpop.permute.xlu1 %481  ;;  %v522_v18 = vadd.f32 %v476_v60, %v426_v26  ;;  %p1900_p1 = scmp.lt.s32.totalorder %s1898_s28, %s1894_s25 }
 0x117   : > { %v2610_v55 = vadd.f32 %v502_v4, %v439_v20  ;;  %v2612_v23 = vpop.permute.xlu0 %479  ;;  %v2684_v20 = vmul.f32 8.922107e-05, %v2048_v7 }
 0x118   : > { %p1901_p2 = por %p1900_p1, %p1899_p0 }
 0x11a   : > { %p1902_p3 = pnand %p1901_p2, %p1897_p13 }
 0x11c   : > { %733 = vrot.lane.b32.xlu2 %v2459_v27, %s1948_s29  ;;  %731 = vrot.lane.b32.xlu1 %v2432_v58, %s1948_s29  ;;  %v2633_v27 = vmul.f32 8.922107e-05, %v2072_v13  ;;  %v429_v58 = vadd.f32 %v2550_v32, %v333_v46 }
 0x11d   : > { %729 = vrot.lane.b32.xlu0 %v2435_v57, %s1948_s29  ;;  %v2641_v57 = vmul.f32 8.922107e-05, %v2120_v25  ;;  %v2655_v25 = vmul.f32 8.922107e-05, %v2027_v2  ;;  %v2669_v2 = vmul.f32 8.922107e-05, %v2141_v30 }
 0x11e   : > { %v572_v9 = vpop.permute.xlu2 %571  ;;  %v488_v34 = vpop.permute.xlu1 %487  ;;  %v525_v52 = vadd.f32 %v482_v6, %v429_v58  ;;  %v240_v13 = vadd.f32 %v2341_v10, %v2633_v27  ;;  %v2658_v6 = vmul.f32 8.922107e-05, %v2096_v19  ;;  %v3679_v58 = vld [vmem:[#allocation94_spill] sm:$0xff] }
 0x11f   : > { %v2627_v0 = vadd.f32 %v572_v9, %v522_v18  ;;  %v2629_v35 = vpop.permute.xlu0 %485  ;;  %v248_v30 = vadd.f32 %v2408_v15, %v2669_v2  ;;  %v3676_v18 = vld [vmem:[#allocation82_spill] sm:$0xff] }
 0x121   : > { %v344_v8 = vadd.f32 %v2511_v5, %v248_v30  ;;  %v3688_v30 = vld [vmem:[#allocation85_spill] sm:$0xff] }
 0x123   : > { %v440_v7 = vadd.f32 %v2546_v39, %v344_v8  ;;  %v2711_v39 = vmul.f32 8.922107e-05, %v2075_v14  ;;  %v3682_v14 = vld [vmem:[#allocation96_spill] sm:$0xff] }
 0x124   : > { %739 = vrot.lane.b32.xlu2 %v2480_v40, %s1948_s29  ;;  %737 = vrot.lane.b32.xlu1 %v2453_v50, %s1948_s29  ;;  %v246_v40 = vadd.f32 %v2383_v37, %v2641_v57  ;;  %v336_v50 = vadd.f32 %v2385_v42, %v240_v13  ;;  %v3683_v13 = vld [vmem:[#allocation64_spill] sm:$0xff] }
 0x125   : > { %735 = vrot.lane.b32.xlu0 %v2456_v49, %s1948_s29 }
 0x126   : > { %v578_v17 = vpop.permute.xlu2 %577  ;;  %v494_v48 = vpop.permute.xlu1 %493  ;;  %v342_v49 = vadd.f32 %v2425_v62, %v246_v40  ;;  %v432_v60 = vadd.f32 %v2562_v47, %v336_v50  ;;  %v233_v62 = vadd.f32 %v2303_v29, %v2655_v25  ;;  %v243_v47 = vadd.f32 %v2362_v43, %v2658_v6 }
 0x127   : > { %v2647_v4 = vadd.f32 %v578_v17, %v525_v52  ;;  %v2649_v32 = vpop.permute.xlu0 %491  ;;  %v2689_v43 = vmul.f32 8.922107e-05, %v2024_v1  ;;  %v236_v1 = vadd.f32 %v2322_v22, %v2684_v20  ;;  %v239_v40 = vadd.f32 %v3683_v13, %v2711_v39 }
 0x128   : > { %v438_v10 = vadd.f32 %v404_v44, %v342_v49  ;;  %v528_v37 = vadd.f32 %v488_v34, %v432_v60  ;;  %v339_v44 = vadd.f32 %v2404_v31, %v243_v47  ;;  %v3677_v34 = vld [vmem:[#allocation8_spill] sm:$0xff] }
 0x129   : > { %v2715_v22 = vmul.f32 8.922107e-05, %v3677_v34 }
 0x12a   : > { %v435_v24 = vadd.f32 %v2574_v56, %v339_v44  ;;  %v3687_v44 = vld [vmem:[#allocation17_spill] sm:$0xff] }
 0x12c   : > { %745 = vrot.lane.b32.xlu2 %v2501_v21, %s1948_s29  ;;  %743 = vrot.lane.b32.xlu1 %v2474_v63, %s1948_s29  ;;  %v531_v31 = vadd.f32 %v494_v48, %v435_v24  ;;  %v3689_v24 = vld [vmem:[#allocation12_spill] sm:$0xff] }
 0x12d   : > { %741 = vrot.lane.b32.xlu0 %v2477_v28, %s1948_s29  ;;  %v329_v28 = vadd.f32 %v2406_v36, %v233_v62  ;;  %v3686_v62 = vld [vmem:[#allocation81_spill] sm:$0xff]  ;;  %v2741_v8 = vmul.f32 8.922107e-05, %v3689_v24  ;;  %v3707_v24 = vld [vmem:[#allocation72_spill] sm:$0xff] }
 0x12e   : > { %v584_v19 = vpop.permute.xlu2 %583  ;;  %v500_v42 = vpop.permute.xlu1 %499 }
 0x12f   : > { %v2675_v21 = vadd.f32 %v584_v19, %v528_v37  ;;  %v534_v53 = vadd.f32 %v500_v42, %v438_v10  ;;  %v2677_v63 = vpop.permute.xlu0 %497  ;;  %v425_v29 = vadd.f32 %v2446_v54, %v329_v28  ;;  %v3684_v10 = vld [vmem:[#allocation49_spill] sm:$0xff]  ;;  %v2737_v28 = vmul.f32 8.922107e-05, %v3687_v44 }
 0x130   : > { %v238_v37 = vadd.f32 %v3684_v10, %v2715_v22 }
 0x131   : > { %v521_v15 = vadd.f32 %v2595_v16, %v425_v29  ;;  %v332_v16 = vadd.f32 %v2427_v61, %v236_v1  ;;  %v3694_v1 = vld [vmem:[#allocation98_spill] sm:$0xff] }
 0x132   : > { %v334_v47 = vadd.f32 %v3686_v62, %v238_v37  ;;  %v3703_v37 = vld [vmem:[#allocation66_spill] sm:$0xff]  ;;  %v3705_v62 = vld [vmem:[#allocation61_spill] sm:$0xff] }
 0x133   : > { %v428_v9 = vadd.f32 %v3676_v18, %v332_v16 }
 0x134   : > { %751 = vrot.lane.b32.xlu2 %v2520_v11, %s1948_s29  ;;  %749 = vrot.lane.b32.xlu1 %v2495_v38, %s1948_s29  ;;  %v235_v38 = vadd.f32 %v2301_v33, %v2689_v43  ;;  %v3680_v33 = vld [vmem:[#allocation89_spill] sm:$0xff] }
 0x135   : > { %747 = vrot.lane.b32.xlu0 %v2498_v45, %s1948_s29  ;;  %v524_v61 = vadd.f32 %v2612_v23, %v428_v9  ;;  %v3685_v23 = vld [vmem:[#allocation80_spill] sm:$0xff] }
 0x136   : > { %v590_v36 = vpop.permute.xlu2 %589  ;;  %v570_v54 = vpop.permute.xlu1 %569  ;;  %v331_v45 = vadd.f32 %v2429_v59, %v235_v38  ;;  %v3681_v59 = vld [vmem:[#allocation90_spill] sm:$0xff]  ;;  %v335_v42 = vadd.f32 %v3685_v23, %v239_v40  ;;  %v3701_v40 = vld [vmem:[#allocation16_spill] sm:$0xff]  ;;  %v3704_v23 = vld [vmem:[#allocation67_spill] sm:$0xff] }
 0x137   : > { %v2702_v5 = vadd.f32 %v590_v36, %v531_v31  ;;  %v617_v56 = vadd.f32 %v570_v54, %v521_v15  ;;  %v504_v11 = vpop.permute.xlu0 %503  ;;  %v3691_v31 = vld [vmem:[#allocation62_spill] sm:$0xff]  ;;  %v3693_v54 = vld [vmem:[#allocation93_spill] sm:$0xff] }
 0x138   : > { %v2706_v26 = vadd.f32 %v504_v11, %v440_v7  ;;  %v427_v46 = vadd.f32 %v3678_v3, %v331_v45  ;;  %v431_v29 = vadd.f32 %v3688_v30, %v335_v42  ;;  %v3692_v7 = vld [vmem:[#allocation63_spill] sm:$0xff]  ;;  %v3695_v45 = vld [vmem:[#allocation68_spill] sm:$0xff] }
 0x139   : > { %v242_v18 = vadd.f32 %v3695_v45, %v2737_v28  ;;  %v3711_v45 = vld [vmem:[#allocation91_spill] sm:$0xff] }
 0x13a   : > { %v523_v52 = vadd.f32 %v3682_v14, %v427_v46  ;;  %v527_v36 = vadd.f32 %v2629_v35, %v431_v29  ;;  %v3696_v46 = vld [vmem:[#allocation53_spill] sm:$0xff] }
 0x13c   : > { %757 = vrot.lane.b32.xlu2 %v3679_v58, %s1948_s29  ;;  %755 = vrot.lane.b32.xlu1 %v3680_v33, %s1948_s29  ;;  %v241_v58 = vadd.f32 %v3696_v46, %v2741_v8 }
 0x13d   : > { %753 = vrot.lane.b32.xlu0 %v3681_v59, %s1948_s29  ;;  %v3698_v59 = vld [vmem:[#allocation84_spill] sm:$0xff] }
 0x13e   : > { %v596_v17 = vpop.permute.xlu2 %595  ;;  %v576_v48 = vpop.permute.xlu1 %575  ;;  %v337_v14 = vadd.f32 %v3698_v59, %v241_v58  ;;  %v3713_v58 = vld [vmem:[#allocation70_spill] sm:$0xff]  ;;  %v3716_v59 = vld [vmem:[#allocation101_spill] sm:$0xff] }
 0x13f   : > { %v2728_v50 = vadd.f32 %v596_v17, %v534_v53  ;;  %v620_v49 = vadd.f32 %v576_v48, %v524_v61  ;;  %v574_v60 = vpop.permute.xlu0 %573  ;;  %v3690_v53 = vld [vmem:[#allocation95_spill] sm:$0xff]  ;;  %v3700_v48 = vld [vmem:[#allocation88_spill] sm:$0xff] }
 0x140   : > { %v2732_v19 = vadd.f32 %v574_v60, %v523_v52  ;;  %v430_v15 = vadd.f32 %v3690_v53, %v334_v47  ;;  %v3697_v61 = vld [vmem:[#allocation83_spill] sm:$0xff]  ;;  %v3699_v52 = vld [vmem:[#allocation21_spill] sm:$0xff]  ;;  %v2765_v60 = vmul.f32 8.922107e-05, %v3701_v40  ;;  %v3706_v47 = vld [vmem:[#allocation100_spill] sm:$0xff] }
 0x141   : > { %v338_v35 = vadd.f32 %v3697_v61, %v242_v18  ;;  %v2761_v17 = vmul.f32 8.922107e-05, %v3699_v52 }
 0x142   : > { %v526_v11 = vadd.f32 %v3694_v1, %v430_v15 }
 0x143   : > { %v434_v13 = vadd.f32 %v3700_v48, %v338_v35  ;;  %v245_v53 = vadd.f32 %v3707_v24, %v2761_v17  ;;  %v3715_v35 = vld [vmem:[#allocation65_spill] sm:$0xff]  ;;  %v3721_v24 = vld [vmem:[#allocation78_spill] sm:$0xff] }
 0x144   : > { %795 = vrot.lane.b32.xlu2 %v3691_v31, %s1949_s30  ;;  %793 = vrot.lane.b32.xlu1 %v3692_v7, %s1949_s30 }
 0x145   : > { %759 = vrot.lane.b32.xlu0 %v3693_v54, %s1948_s29  ;;  %v530_v42 = vadd.f32 %v2649_v32, %v434_v13 }
 0x146   : > { %v666_v38 = vpop.permute.xlu2 %665  ;;  %v582_v16 = vpop.permute.xlu1 %581 }
 0x147   : > { %v2754_v9 = vadd.f32 %v666_v38, %v617_v56  ;;  %v623_v34 = vadd.f32 %v582_v16, %v527_v36  ;;  %v580_v3 = vpop.permute.xlu0 %579  ;;  %v3702_v56 = vld [vmem:[#allocation97_spill] sm:$0xff]  ;;  %v3710_v38 = vld [vmem:[#allocation87_spill] sm:$0xff] }
 0x148   : > { %v622_v33 = vadd.f32 %v580_v3, %v526_v11  ;;  %v433_v10 = vadd.f32 %v3702_v56, %v337_v14  ;;  %v3708_v36 = vld [vmem:[#allocation57_spill] sm:$0xff]  ;;  %v3709_v11 = vld [vmem:[#allocation86_spill] sm:$0xff]  ;;  %v3712_v3 = vld [vmem:[#allocation99_spill] sm:$0xff] }
 0x149   : > { %v244_v54 = vadd.f32 %v3708_v36, %v2765_v60  ;;  %v341_v32 = vadd.f32 %v3709_v11, %v245_v53  ;;  %v3722_v53 = vld [vmem:[#allocation73_spill] sm:$0xff] }
 0x14a   : > { %v529_v44 = vadd.f32 %v3706_v47, %v433_v10 }
 0x14b   : > { %v340_v16 = vadd.f32 %v3710_v38, %v244_v54  ;;  %v437_v18 = vadd.f32 %v3711_v45, %v341_v32  ;;  %v3724_v32 = vld [vmem:[#allocation79_spill] sm:$0xff]  ;;  %v3725_v38 = vld [vmem:[#allocation76_spill] sm:$0xff] }
 0x14c   : > { %801 = vrot.lane.b32.xlu2 %v3703_v37, %s1949_s30  ;;  %799 = vrot.lane.b32.xlu1 %v3704_v23, %s1949_s30  ;;  %v3717_v37 = vld [vmem:[#allocation74_spill] sm:$0xff]  ;;  %v3718_v23 = vld [vmem:[#allocation75_spill] sm:$0xff] }
 0x14d   : > { %797 = vrot.lane.b32.xlu0 %v3705_v62, %s1949_s30  ;;  %v436_v46 = vadd.f32 %v3712_v3, %v340_v16  ;;  %v533_v61 = vadd.f32 %v2677_v63, %v437_v18  ;;  %v3719_v63 = vld [vmem:[#allocation69_spill] sm:$0xff] }
 0x14e   : > { %v672_v30 = vpop.permute.xlu2 %671  ;;  %v588_v29 = vpop.permute.xlu1 %587 }
 0x14f   : > { %v2778_v15 = vadd.f32 %v672_v30, %v620_v49  ;;  %v626_v31 = vadd.f32 %v588_v29, %v530_v42  ;;  %v586_v7 = vpop.permute.xlu0 %585  ;;  %v3714_v49 = vld [vmem:[#allocation71_spill] sm:$0xff]  ;;  %v532_v14 = vadd.f32 %v3716_v59, %v436_v46  ;;  %v3720_v29 = vld [vmem:[#allocation77_spill] sm:$0xff] }
 0x150   : > { %v625_v1 = vadd.f32 %v586_v7, %v529_v44 }
 0x154   : > { %807 = vrot.lane.b32.xlu2 %v3713_v58, %s1949_s30  ;;  %805 = vrot.lane.b32.xlu1 %v3714_v49, %s1949_s30  ;;  %v3727_v58 = vld [vmem:[#allocation44_spill] sm:$0xff]  ;;  %v3728_v49 = vld [vmem:[#allocation45_spill] sm:$0xff] }
 0x155   : > { %803 = vrot.lane.b32.xlu0 %v3715_v35, %s1949_s30 }
 0x156   : > { %v678_v52 = vpop.permute.xlu2 %677  ;;  %v594_v48 = vpop.permute.xlu1 %593 }
 0x157   : > { %v2794_v13 = vadd.f32 %v678_v52, %v623_v34  ;;  %v629_v40 = vadd.f32 %v594_v48, %v533_v61  ;;  %v592_v56 = vpop.permute.xlu0 %591  ;;  %v3729_v48 = vld [vmem:[#allocation46_spill] sm:$0xff] }
 0x158   : > { %v628_v10 = vadd.f32 %v592_v56, %v532_v14 }
 0x15c   : > { %813 = vrot.lane.b32.xlu2 %v3717_v37, %s1949_s30  ;;  %811 = vrot.lane.b32.xlu1 %v3718_v23, %s1949_s30 }
 0x15d   : > { %809 = vrot.lane.b32.xlu0 %v3719_v63, %s1949_s30 }
 0x15e   : > { %v684_v42 = vpop.permute.xlu2 %683  ;;  %v600_v62 = vpop.permute.xlu1 %599 }
 0x15f   : > { %v2802_v47 = vadd.f32 %v684_v42, %v626_v31  ;;  %v632_v44 = vadd.f32 %v600_v62, %v2706_v26  ;;  %v598_v34 = vpop.permute.xlu0 %597  ;;  %v3732_v62 = vld [vmem:[#allocation50_spill] sm:$0xff] }
 0x160   : > { %v631_v30 = vadd.f32 %v598_v34, %v2610_v55  ;;  %v3723_v55 = vld [vmem:[#allocation40_spill] sm:$0xff] }
 0x164   : > { %819 = vrot.lane.b32.xlu2 %v3720_v29, %s1949_s30  ;;  %817 = vrot.lane.b32.xlu1 %v3721_v24, %s1949_s30 }
 0x165   : > { %815 = vrot.lane.b32.xlu0 %v3722_v53, %s1949_s30 }
 0x166   : > { %v690_v7 = vpop.permute.xlu2 %689  ;;  %v670_v36 = vpop.permute.xlu1 %669 }
 0x167   : > { %v2812_v54 = vadd.f32 %v690_v7, %v629_v40  ;;  %v715_v31 = vadd.f32 %v670_v36, %v2732_v19  ;;  %v668_v11 = vpop.permute.xlu0 %667  ;;  %v3731_v40 = vld [vmem:[#allocation48_spill] sm:$0xff]  ;;  %v3735_v36 = vld [vmem:[#allocation54_spill] sm:$0xff] }
 0x168   : > { %v714_v26 = vadd.f32 %v668_v11, %v2627_v0  ;;  %v3726_v0 = vld [vmem:[#allocation43_spill] sm:$0xff] }
 0x16c   : > { %857 = vrot.lane.b32.xlu2 %v3723_v55, %s1950_s2  ;;  %823 = vrot.lane.b32.xlu1 %v3724_v32, %s1949_s30 }
 0x16d   : > { %821 = vrot.lane.b32.xlu0 %v3725_v38, %s1949_s30 }
 0x16e   : > { %v696_v16 = vpop.permute.xlu2 %695  ;;  %v676_v45 = vpop.permute.xlu1 %675 }
 0x16f   : > { %v2822_v18 = vadd.f32 %v696_v16, %v632_v44  ;;  %v718_v3 = vadd.f32 %v676_v45, %v622_v33  ;;  %v674_v46 = vpop.permute.xlu0 %673  ;;  %v3734_v44 = vld [vmem:[#allocation52_spill] sm:$0xff]  ;;  %v3738_v45 = vld [vmem:[#allocation58_spill] sm:$0xff] }
 0x170   : > { %v717_v19 = vadd.f32 %v674_v46, %v2647_v4  ;;  %v3730_v4 = vld [vmem:[#allocation47_spill] sm:$0xff] }
 0x174   : > { %863 = vrot.lane.b32.xlu2 %v3726_v0, %s1950_s2  ;;  %861 = vrot.lane.b32.xlu1 %v3727_v58, %s1950_s2 }
 0x175   : > { %859 = vrot.lane.b32.xlu0 %v3728_v49, %s1950_s2 }
 0x176   : > { %v734_v61 = vpop.permute.xlu2 %733  ;;  %v682_v35 = vpop.permute.xlu1 %681 }
 0x177   : > { %v2831_v59 = vadd.f32 %v734_v61, %v715_v31  ;;  %v721_v14 = vadd.f32 %v682_v35, %v625_v1  ;;  %v680_v52 = vpop.permute.xlu0 %679  ;;  %v3737_v31 = vld [vmem:[#allocation56_spill] sm:$0xff]  ;;  %v3742_v35 = vld [vmem:[#allocation25_spill] sm:$0xff] }
 0x178   : > { %v720_v33 = vadd.f32 %v680_v52, %v2675_v21  ;;  %v3733_v21 = vld [vmem:[#allocation51_spill] sm:$0xff] }
 0x17c   : > { %869 = vrot.lane.b32.xlu2 %v3729_v48, %s1950_s2  ;;  %867 = vrot.lane.b32.xlu1 %v3730_v4, %s1950_s2 }
 0x17d   : > { %865 = vrot.lane.b32.xlu0 %v3731_v40, %s1950_s2 }
 0x17e   : > { %v740_v56 = vpop.permute.xlu2 %739  ;;  %v688_v37 = vpop.permute.xlu1 %687 }
 0x17f   : > { %v2840_v23 = vadd.f32 %v740_v56, %v718_v3  ;;  %v724_v63 = vadd.f32 %v688_v37, %v628_v10  ;;  %v686_v42 = vpop.permute.xlu0 %685  ;;  %v3740_v3 = vld [vmem:[#allocation60_spill] sm:$0xff] }
 0x180   : > { %v723_v1 = vadd.f32 %v686_v42, %v2702_v5  ;;  %v3736_v5 = vld [vmem:[#allocation55_spill] sm:$0xff]  ;;  %v3745_v37 = vld [vmem:[#allocation28_spill] sm:$0xff] }
 0x184   : > { %875 = vrot.lane.b32.xlu2 %v3732_v62, %s1950_s2  ;;  %873 = vrot.lane.b32.xlu1 %v3733_v21, %s1950_s2 }
 0x185   : > { %871 = vrot.lane.b32.xlu0 %v3734_v44, %s1950_s2 }
 0x186   : > { %v746_v34 = vpop.permute.xlu2 %745  ;;  %v694_v29 = vpop.permute.xlu1 %693 }
 0x187   : > { %v2849_v24 = vadd.f32 %v746_v34, %v721_v14  ;;  %v727_v53 = vadd.f32 %v694_v29, %v631_v30  ;;  %v692_v7 = vpop.permute.xlu0 %691  ;;  %v3743_v14 = vld [vmem:[#allocation26_spill] sm:$0xff]  ;;  %v3747_v29 = vld [vmem:[#allocation36_spill] sm:$0xff] }
 0x188   : > { %v726_v10 = vadd.f32 %v692_v7, %v2728_v50  ;;  %v3739_v50 = vld [vmem:[#allocation59_spill] sm:$0xff] }
 0x18c   : > { %881 = vrot.lane.b32.xlu2 %v3735_v36, %s1950_s2  ;;  %879 = vrot.lane.b32.xlu1 %v3736_v5, %s1950_s2 }
 0x18d   : > { %877 = vrot.lane.b32.xlu0 %v3737_v31, %s1950_s2 }
 0x18e   : > { %v752_v11 = vpop.permute.xlu2 %751  ;;  %v732_v55 = vpop.permute.xlu1 %731 }
 0x18f   : > { %v2858_v32 = vadd.f32 %v752_v11, %v724_v63  ;;  %v778_v38 = vadd.f32 %v732_v55, %v714_v26  ;;  %v730_v16 = vpop.permute.xlu0 %729  ;;  %v3746_v63 = vld [vmem:[#allocation29_spill] sm:$0xff]  ;;  %v3750_v55 = vld [vmem:[#allocation39_spill] sm:$0xff] }
 0x190   : > { %v777_v30 = vadd.f32 %v730_v16, %v2754_v9  ;;  %v3741_v9 = vld [vmem:[#allocation30_spill] sm:$0xff] }
 0x194   : > { %887 = vrot.lane.b32.xlu2 %v3738_v45, %s1950_s2  ;;  %885 = vrot.lane.b32.xlu1 %v3739_v50, %s1950_s2 }
 0x195   : > { %883 = vrot.lane.b32.xlu0 %v3740_v3, %s1950_s2 }
 0x196   : > { %v758_v46 = vpop.permute.xlu2 %757  ;;  %v738_v0 = vpop.permute.xlu1 %737 }
 0x197   : > { %v2867_v58 = vadd.f32 %v758_v46, %v727_v53  ;;  %v781_v49 = vadd.f32 %v738_v0, %v717_v19  ;;  %v736_v61 = vpop.permute.xlu0 %735  ;;  %v3749_v53 = vld [vmem:[#allocation32_spill] sm:$0xff]  ;;  %v3753_v0 = vld [vmem:[#allocation42_spill] sm:$0xff] }
 0x198   : > { %v780_v26 = vadd.f32 %v736_v61, %v2778_v15  ;;  %v3744_v15 = vld [vmem:[#allocation33_spill] sm:$0xff] }
 0x19c   : > { %925 = vrot.lane.b32.xlu2 %v3741_v9, %s1951_s3  ;;  %923 = vrot.lane.b32.xlu1 %v3742_v35, %s1951_s3 }
 0x19d   : > { %921 = vrot.lane.b32.xlu0 %v3743_v14, %s1951_s3 }
 0x19e   : > { %v796_v52 = vpop.permute.xlu2 %795  ;;  %v744_v48 = vpop.permute.xlu1 %743 }
 0x19f   : > { %v2876_v4 = vadd.f32 %v796_v52, %v778_v38  ;;  %v784_v40 = vadd.f32 %v744_v48, %v720_v33  ;;  %v742_v56 = vpop.permute.xlu0 %741  ;;  %v3752_v38 = vld [vmem:[#allocation35_spill] sm:$0xff] }
 0x1a0   : > { %v783_v19 = vadd.f32 %v742_v56, %v2794_v13  ;;  %v3748_v13 = vld [vmem:[#allocation31_spill] sm:$0xff] }
 0x1a1   : > { %v3757_v48 = vld [vmem:[#allocation7_spill] sm:$0xff] }
 0x1a4   : > { %931 = vrot.lane.b32.xlu2 %v3744_v15, %s1951_s3  ;;  %929 = vrot.lane.b32.xlu1 %v3745_v37, %s1951_s3 }
 0x1a5   : > { %927 = vrot.lane.b32.xlu0 %v3746_v63, %s1951_s3 }
 0x1a6   : > { %v802_v42 = vpop.permute.xlu2 %801  ;;  %v750_v62 = vpop.permute.xlu1 %749 }
 0x1a7   : > { %v2885_v21 = vadd.f32 %v802_v42, %v781_v49  ;;  %v787_v44 = vadd.f32 %v750_v62, %v723_v1  ;;  %v748_v34 = vpop.permute.xlu0 %747  ;;  %v3755_v49 = vld [vmem:[#allocation38_spill] sm:$0xff] }
 0x1a8   : > { %v786_v33 = vadd.f32 %v748_v34, %v2802_v47  ;;  %v3751_v47 = vld [vmem:[#allocation34_spill] sm:$0xff] }
 0x1a9   : > { %v3760_v62 = vld [vmem:[#allocation10_spill] sm:$0xff] }
 0x1ac   : > { %937 = vrot.lane.b32.xlu2 %v3747_v29, %s1951_s3  ;;  %935 = vrot.lane.b32.xlu1 %v3748_v13, %s1951_s3 }
 0x1ad   : > { %933 = vrot.lane.b32.xlu0 %v3749_v53, %s1951_s3 }
 0x1ae   : > { %v808_v7 = vpop.permute.xlu2 %807  ;;  %v756_v36 = vpop.permute.xlu1 %755 }
 0x1af   : > { %v2894_v5 = vadd.f32 %v808_v7, %v784_v40  ;;  %v790_v31 = vadd.f32 %v756_v36, %v726_v10  ;;  %v754_v11 = vpop.permute.xlu0 %753  ;;  %v3758_v40 = vld [vmem:[#allocation41_spill] sm:$0xff]  ;;  %v3762_v36 = vld [vmem:[#allocation14_spill] sm:$0xff] }
 0x1b0   : > { %v789_v1 = vadd.f32 %v754_v11, %v2812_v54  ;;  %v3754_v54 = vld [vmem:[#allocation37_spill] sm:$0xff] }
 0x1b4   : > { %943 = vrot.lane.b32.xlu2 %v3750_v55, %s1951_s3  ;;  %941 = vrot.lane.b32.xlu1 %v3751_v47, %s1951_s3 }
 0x1b5   : > { %939 = vrot.lane.b32.xlu0 %v3752_v38, %s1951_s3 }
 0x1b6   : > { %v814_v16 = vpop.permute.xlu2 %813  ;;  %v794_v45 = vpop.permute.xlu1 %793 }
 0x1b7   : > { %v2903_v50 = vadd.f32 %v814_v16, %v787_v44  ;;  %v841_v3 = vadd.f32 %v794_v45, %v777_v30  ;;  %v760_v46 = vpop.permute.xlu0 %759  ;;  %v3761_v44 = vld [vmem:[#allocation6_spill] sm:$0xff]  ;;  %v3765_v45 = vld [vmem:[#allocation19_spill] sm:$0xff] }
 0x1b8   : > { %v792_v10 = vadd.f32 %v760_v46, %v2822_v18  ;;  %v3756_v18 = vld [vmem:[#allocation11_spill] sm:$0xff] }
 0x1bc   : > { %949 = vrot.lane.b32.xlu2 %v3753_v0, %s1951_s3  ;;  %947 = vrot.lane.b32.xlu1 %v3754_v54, %s1951_s3 }
 0x1bd   : > { %945 = vrot.lane.b32.xlu0 %v3755_v49, %s1951_s3 }
 0x1be   : > { %v820_v61 = vpop.permute.xlu2 %819  ;;  %v800_v9 = vpop.permute.xlu1 %799 }
 0x1bf   : > { %v2912_v35 = vadd.f32 %v820_v61, %v790_v31  ;;  %v844_v14 = vadd.f32 %v800_v9, %v780_v26  ;;  %v798_v52 = vpop.permute.xlu0 %797  ;;  %v3764_v31 = vld [vmem:[#allocation9_spill] sm:$0xff]  ;;  %v3768_v9 = vld [vmem:[#allocation22_spill] sm:$0xff] }
 0x1c0   : > { %v843_v30 = vadd.f32 %v798_v52, %v2831_v59  ;;  %v3759_v59 = vld [vmem:[#allocation5_spill] sm:$0xff] }
 0x1c4   : > { %987 = vrot.lane.b32.xlu2 %v3756_v18, %s1952_s4  ;;  %985 = vrot.lane.b32.xlu1 %v3757_v48, %s1952_s4 }
 0x1c5   : > { %951 = vrot.lane.b32.xlu0 %v3758_v40, %s1951_s3 }
 0x1c6   : > { %v858_v56 = vpop.permute.xlu2 %857  ;;  %v806_v15 = vpop.permute.xlu1 %805 }
 0x1c7   : > { %v2921_v37 = vadd.f32 %v858_v56, %v841_v3  ;;  %v847_v63 = vadd.f32 %v806_v15, %v783_v19  ;;  %v804_v42 = vpop.permute.xlu0 %803  ;;  %v3767_v3 = vld [vmem:[#allocation13_spill] sm:$0xff] }
 0x1c8   : > { %v846_v26 = vadd.f32 %v804_v42, %v2840_v23  ;;  %v3763_v23 = vld [vmem:[#allocation15_spill] sm:$0xff] }
 0x1cc   : > { %993 = vrot.lane.b32.xlu2 %v3759_v59, %s1952_s4  ;;  %991 = vrot.lane.b32.xlu1 %v3760_v62, %s1952_s4 }
 0x1cd   : > { %989 = vrot.lane.b32.xlu0 %v3761_v44, %s1952_s4 }
 0x1ce   : > { %v864_v34 = vpop.permute.xlu2 %863  ;;  %v812_v29 = vpop.permute.xlu1 %811 }
 0x1cf   : > { %v2930_v13 = vadd.f32 %v864_v34, %v844_v14  ;;  %v850_v53 = vadd.f32 %v812_v29, %v786_v33  ;;  %v810_v7 = vpop.permute.xlu0 %809  ;;  %v3770_v14 = vld [vmem:[#allocation24_spill] sm:$0xff] }
 0x1d0   : > { %v849_v19 = vadd.f32 %v810_v7, %v2849_v24  ;;  %v3766_v24 = vld [vmem:[#allocation20_spill] sm:$0xff] }
 0x1d4   : > { %999 = vrot.lane.b32.xlu2 %v3762_v36, %s1952_s4  ;;  %997 = vrot.lane.b32.xlu1 %v3763_v23, %s1952_s4 }
 0x1d5   : > { %995 = vrot.lane.b32.xlu0 %v3764_v31, %s1952_s4 }
 0x1d6   : > { %v870_v11 = vpop.permute.xlu2 %869  ;;  %v818_v55 = vpop.permute.xlu1 %817 }
 0x1d7   : > { %v2939_v47 = vadd.f32 %v870_v11, %v847_v63  ;;  %v853_v38 = vadd.f32 %v818_v55, %v789_v1  ;;  %v816_v16 = vpop.permute.xlu0 %815 }
 0x1d8   : > { %v852_v33 = vadd.f32 %v816_v16, %v2858_v32  ;;  %v3769_v32 = vld [vmem:[#allocation23_spill] sm:$0xff] }
 0x1dc   : > { %1005 = vrot.lane.b32.xlu2 %v3765_v45, %s1952_s4  ;;  %1003 = vrot.lane.b32.xlu1 %v3766_v24, %s1952_s4 }
 0x1dd   : > { %1001 = vrot.lane.b32.xlu0 %v3767_v3, %s1952_s4 }
 0x1de   : > { %v876_v46 = vpop.permute.xlu2 %875  ;;  %v824_v0 = vpop.permute.xlu1 %823 }
 0x1df   : > { %v2948_v54 = vadd.f32 %v876_v46, %v850_v53  ;;  %v856_v49 = vadd.f32 %v824_v0, %v792_v10  ;;  %v822_v61 = vpop.permute.xlu0 %821 }
 0x1e0   : > { %v855_v1 = vadd.f32 %v822_v61, %v2867_v58 }
 0x1e4   : > { %1013 = vrot.lane.b32.xlu2 %v3768_v9, %s1952_s4  ;;  %1011 = vrot.lane.b32.xlu1 %v3769_v32, %s1952_s4 }
 0x1e5   : > { %1009 = vrot.lane.b32.xlu0 %v3770_v14, %s1952_s4 }
 0x1e6   : > { %v882_v52 = vpop.permute.xlu2 %881  ;;  %v862_v18 = vpop.permute.xlu1 %861 }
 0x1e7   : > { %v2957_v48 = vadd.f32 %v882_v52, %v853_v38  ;;  %v907_v40 = vadd.f32 %v862_v18, %v843_v30  ;;  %v860_v56 = vpop.permute.xlu0 %859 }
 0x1e8   : > { %v906_v10 = vadd.f32 %v860_v56, %v2876_v4 }
 0x1ec   : > { %1069 = vrot.lane.b32.xlu2 %v2689_v43, %s1953_s5  ;;  %1067 = vrot.lane.b32.xlu1 %v2603_v51, %s1953_s5 }
 0x1ed   : > { %1065 = vrot.lane.b32.xlu0 %v2655_v25, %s1953_s5 }
 0x1ee   : > { %v888_v58 = vpop.permute.xlu2 %887  ;;  %v868_v15 = vpop.permute.xlu1 %867 }
 0x1ef   : > { %v2966_v63 = vadd.f32 %v888_v58, %v856_v49  ;;  %v910_v42 = vadd.f32 %v868_v15, %v846_v26  ;;  %v866_v59 = vpop.permute.xlu0 %865 }
 0x1f0   : > { %v909_v30 = vadd.f32 %v866_v59, %v2885_v21 }
 0x1f4   : > { %1077 = vrot.lane.b32.xlu2 %v2711_v39, %s1953_s5  ;;  %1075 = vrot.lane.b32.xlu1 %v2715_v22, %s1953_s5 }
 0x1f5   : > { %1073 = vrot.lane.b32.xlu0 %v2616_v12, %s1953_s5 }
 0x1f6   : > { %v926_v51 = vpop.permute.xlu2 %925  ;;  %v874_v43 = vpop.permute.xlu1 %873 }
 0x1f7   : > { %v2975_v25 = vadd.f32 %v926_v51, %v907_v40  ;;  %v913_v4 = vadd.f32 %v874_v43, %v849_v19  ;;  %v872_v62 = vpop.permute.xlu0 %871 }
 0x1f8   : > { %v912_v26 = vadd.f32 %v872_v62, %v2894_v5 }
 0x1fc   : > { %1085 = vrot.lane.b32.xlu2 %v2658_v6, %s1953_s5  ;;  %1083 = vrot.lane.b32.xlu1 %v2737_v28, %s1953_s5 }
 0x1fd   : > { %1081 = vrot.lane.b32.xlu0 %v2741_v8, %s1953_s5 }
 0x1fe   : > { %v932_v39 = vpop.permute.xlu2 %931  ;;  %v880_v22 = vpop.permute.xlu1 %879 }
 0x1ff   : > { %v974_v12 = vadd.f32 %v932_v39, %v910_v42  ;;  %v916_v21 = vadd.f32 %v880_v22, %v852_v33  ;;  %v878_v44 = vpop.permute.xlu0 %877 }
 0x200   : > { %v915_v34 = vadd.f32 %v878_v44, %v2903_v50  ;;  %v3771_v50 = vld [vmem:[#allocation27_spill] sm:$0xff] }
 0x204   : > { %1093 = vrot.lane.b32.xlu2 %v2590_v41, %s1953_s5  ;;  %1091 = vrot.lane.b32.xlu1 %v2641_v57, %s1953_s5  ;;  %v3772_v41 = vld [vmem:[#allocation18_spill] sm:$0xff] }
 0x205   : > { %1089 = vrot.lane.b32.xlu0 %v2761_v17, %s1953_s5 }
 0x206   : > { %v938_v6 = vpop.permute.xlu2 %937  ;;  %v886_v28 = vpop.permute.xlu1 %885 }
 0x207   : > { %v977_v5 = vadd.f32 %v938_v6, %v913_v4  ;;  %v919_v8 = vadd.f32 %v886_v28, %v855_v1  ;;  %v884_v29 = vpop.permute.xlu0 %883 }
 0x208   : > { %v918_v53 = vadd.f32 %v884_v29, %v2912_v35 }
 0x20c   : > { %1071 = vrot.lane.b32.xlu2 %v2684_v20, %s1953_s5  ;;  %1015 = vrot.lane.b32.xlu1 %v3771_v50, %s1952_s4 }
 0x20d   : > { %1007 = vrot.lane.b32.xlu0 %v3772_v41, %s1952_s4 }
 0x20e   : > { %v944_v57 = vpop.permute.xlu2 %943  ;;  %v924_v7 = vpop.permute.xlu1 %923 }
 0x20f   : > { %v2998_v19 = vadd.f32 %v944_v57, %v916_v21  ;;  %v970_v17 = vadd.f32 %v924_v7, %v906_v10  ;;  %v922_v36 = vpop.permute.xlu0 %921 }
 0x210   : > { %v969_v23 = vadd.f32 %v922_v36, %v2921_v37 }
 0x214   : > { %1087 = vrot.lane.b32.xlu1 %v2765_v60, %s1953_s5  ;;  %1095 = vrot.lane.b32.xlu2 %v2669_v2, %s1953_s5 }
 0x215   : > { %1079 = vrot.lane.b32.xlu0 %v2633_v27, %s1953_s5 }
 0x216   : > { %v950_v20 = vpop.permute.xlu2 %949  ;;  %v930_v35 = vpop.permute.xlu1 %929 }
 0x217   : > { %v983_v31 = vadd.f32 %v950_v20, %v919_v8  ;;  %v973_v11 = vadd.f32 %v930_v35, %v909_v30  ;;  %v928_v55 = vpop.permute.xlu0 %927 }
 0x218   : > { %v972_v38 = vadd.f32 %v928_v55, %v2930_v13 }
 0x21e   : > { %v988_v16 = vpop.permute.xlu2 %987  ;;  %v936_v33 = vpop.permute.xlu1 %935 }
 0x21f   : > { %v976_v45 = vadd.f32 %v936_v33, %v912_v26  ;;  %v934_v37 = vpop.permute.xlu0 %933 }
 0x220   : > { %v975_v24 = vadd.f32 %v934_v37, %v2939_v47 }
 0x226   : > { %v994_v60 = vpop.permute.xlu2 %993  ;;  %v942_v3 = vpop.permute.xlu1 %941 }
 0x227   : > { %v3009_v46 = vadd.f32 %v994_v60, %v973_v11  ;;  %v979_v2 = vadd.f32 %v942_v3, %v915_v34  ;;  %v940_v0 = vpop.permute.xlu0 %939 }
 0x228   : > { %v978_v27 = vadd.f32 %v940_v0, %v2948_v54 }
 0x22e   : > { %v1000_v49 = vpop.permute.xlu2 %999  ;;  %v948_v61 = vpop.permute.xlu1 %947 }
 0x22f   : > { %v3012_v1 = vadd.f32 %v1000_v49, %v976_v45  ;;  %v3014_v9 = vadd.f32 %v948_v61, %v918_v53  ;;  %v946_v13 = vpop.permute.xlu0 %945 }
 0x230   : > { %v3017_v32 = vadd.f32 %v946_v13, %v2957_v48 }
 0x231   : > { %3773 = vst [vmem:[#allocation82_spill] sm:$0xff] %v3012_v1 }
 0x236   : > { %v1006_v14 = vpop.permute.xlu2 %1005  ;;  %v986_v47 = vpop.permute.xlu1 %985 }
 0x237   : > { %v1043_v52 = vadd.f32 %v1006_v14, %v979_v2  ;;  %v952_v18 = vpop.permute.xlu0 %951  ;;  %v1033_v50 = vadd.f32 %v986_v47, %v969_v23 }
 0x238   : > { %v3020_v40 = vadd.f32 %v952_v18, %v2966_v63 }
 0x23e   : > { %v1014_v56 = vpop.permute.xlu2 %1013  ;;  %v992_v10 = vpop.permute.xlu1 %991 }
 0x23f   : > { %v1047_v54 = vadd.f32 %v1014_v56, %v983_v31  ;;  %v990_v58 = vpop.permute.xlu0 %989  ;;  %v1036_v36 = vadd.f32 %v992_v10, %v972_v38 }
 0x240   : > { %v1035_v63 = vadd.f32 %v990_v58, %v2975_v25 }
 0x246   : > { %v1070_v15 = vpop.permute.xlu2 %1069  ;;  %v998_v42 = vpop.permute.xlu1 %997 }
 0x247   : > { %v1039_v59 = vadd.f32 %v998_v42, %v975_v24  ;;  %v996_v30 = vpop.permute.xlu0 %995  ;;  %v1115_v22 = vadd.f32 %v1070_v15, %v1035_v63 }
 0x248   : > { %v3022_v51 = vadd.f32 %v996_v30, %v974_v12 }
 0x249   : > { %v3031_v34 = vmul.f32 0.21296753, %v1115_v22  ;;  %v3033_v28 = vmul.f32 0.26596427, %v1115_v22  ;;  %v3037_v8 = vmul.f32 0.0010281965, %v1115_v22 }
 0x24a   : > { %v3039_v29 = vmul.f32 0.007597402, %v1115_v22  ;;  %v3041_v53 = vmul.f32 0.035994347, %v1115_v22  ;;  %v3043_v41 = vmul.f32 0.109341174, %v1115_v22 }
 0x24b   : > { %v3049_v7 = vmul.f32 8.922107e-05, %v1115_v22  ;;  %v1165_v31 = vrot.slane %v3037_v8, 1 }
 0x24c   : > { %v1226_v11 = vrot.slane %v3039_v29, 2  ;;  %v1287_v55 = vrot.slane %v3041_v53, 3 }
 0x24e   : > { %v1078_v43 = vpop.permute.xlu2 %1077  ;;  %v1004_v48 = vpop.permute.xlu1 %1003 }
 0x24f   : > { %v3024_v4 = vadd.f32 %v1078_v43, %v1039_v59  ;;  %v3026_v62 = vadd.f32 %v1004_v48, %v978_v27  ;;  %v1002_v26 = vpop.permute.xlu0 %1001 }
 0x250   : > { %v3028_v39 = vadd.f32 %v1002_v26, %v977_v5  ;;  %v1034_v5 = vadd.f32 %v988_v16, %v970_v17 }
 0x251   : > { %v3047_v57 = vmul.f32 0.21296753, %v3024_v4  ;;  %v3052_v20 = vmul.f32 0.26596427, %v3024_v4 }
 0x253   : > { %3774 = vst [vmem:[#allocation8_spill] sm:$0xff] %v3052_v20 }
 0x256   : > { %v1086_v21 = vpop.permute.xlu2 %1085  ;;  %v1012_v44 = vpop.permute.xlu1 %1011 }
 0x257   : > { %v1010_v6 = vpop.permute.xlu0 %1009  ;;  %v3035_v12 = vadd.f32 %v1086_v21, %v1043_v52  ;;  %v3076_v14 = vadd.f32 %v1012_v44, %v3014_v9 }
 0x258   : > { %v3087_v10 = vadd.f32 %v1010_v6, %v3017_v32 }
 0x259   : > { %v3055_v35 = vmul.f32 0.21296753, %v3035_v12  ;;  %v3058_v17 = vmul.f32 0.26596427, %v3035_v12 }
 0x25e   : > { %v1094_v16 = vpop.permute.xlu2 %1093  ;;  %v1068_v33 = vpop.permute.xlu1 %1067 }
 0x25f   : > { %v3069_v3 = vadd.f32 %v1094_v16, %v1047_v54  ;;  %v1114_v2 = vadd.f32 %v1068_v33, %v1034_v5  ;;  %v1066_v0 = vpop.permute.xlu0 %1065 }
 0x260   : > { %v1113_v56 = vadd.f32 %v1066_v0, %v1033_v50 }
 0x261   : > { %v3079_v47 = vmul.f32 0.21296753, %v3069_v3  ;;  %v3082_v52 = vmul.f32 0.26596427, %v3069_v3  ;;  %v3084_v18 = vmul.f32 8.922107e-05, %v1114_v2 }
 0x262   : > { %v3089_v54 = vmul.f32 0.0010281965, %v1114_v2  ;;  %v1199_v58 = vmul.f32 0.007597402, %v1114_v2  ;;  %v1260_v9 = vmul.f32 0.035994347, %v1114_v2 }
 0x263   : > { %v3093_v59 = vmul.f32 0.109341174, %v1114_v2  ;;  %v1382_v30 = vmul.f32 0.21296753, %v1114_v2  ;;  %v1443_v63 = vmul.f32 0.26596427, %v1114_v2 }
 0x264   : > { %v1163_v43 = vrot.slane %v3089_v54, 1  ;;  %v1224_v48 = vrot.slane %v1199_v58, 2  ;;  %v1285_v26 = vrot.slane %v1260_v9, 3  ;;  %v1129_v21 = vmul.f32 8.922107e-05, %v1113_v56 }
 0x265   : > { %v1346_v32 = vrot.slane %v3093_v59, 4  ;;  %v1407_v22 = vrot.slane %v1382_v30, 5  ;;  %v1137_v44 = vmul.f32 0.0010281965, %v1113_v56  ;;  %v1468_v6 = vrot.slane %v1443_v63, 6 }
 0x266   : > { %v1198_v5 = vmul.f32 0.007597402, %v1113_v56  ;;  %v1259_v50 = vmul.f32 0.035994347, %v1113_v56  ;;  %v1072_v16 = vpop.permute.xlu2 %1071  ;;  %v1166_v33 = vsel %vm1161_vm0, %v1163_v43, %v1165_v31  ;;  %v1076_v0 = vpop.permute.xlu1 %1075  ;;  %v1320_v60 = vmul.f32 0.109341174, %v1113_v56 }
 0x267   : > { %v1162_v49 = vrot.slane %v1137_v44, 1  ;;  %v1381_v13 = vmul.f32 0.21296753, %v1113_v56  ;;  %v1116_v61 = vadd.f32 %v1072_v16, %v1036_v36  ;;  %v1074_v58 = vpop.permute.xlu0 %1073  ;;  %v1442_v15 = vmul.f32 0.26596427, %v1113_v56 }
 0x268   : > { %v1223_v42 = vrot.slane %v1198_v5, 2  ;;  %v1284_v2 = vrot.slane %v1259_v50, 3  ;;  %v1191_v27 = vadd.f32 %v1166_v33, %v3084_v18  ;;  %v1345_v37 = vrot.slane %v1320_v60, 4 }
 0x269   : > { %v1164_v24 = vsel %vm1161_vm0, %v1162_v49, %v1163_v43  ;;  %v1406_v63 = vrot.slane %v1381_v13, 5  ;;  %v1504_v45 = vrot.slane %v1381_v13, 7  ;;  %v1467_v44 = vrot.slane %v1442_v15, 6 }
 0x26a   : > { %v1190_v23 = vadd.f32 %v1164_v24, %v1129_v21  ;;  %v1225_v25 = vsel %vm1222_vm1, %v1223_v42, %v1224_v48  ;;  %v1286_v31 = vsel %vm1283_vm2, %v1284_v2, %v1285_v26  ;;  %v1347_v38 = vsel %vm1344_vm3, %v1345_v37, %v1346_v32 }
 0x26b   : > { %v1408_v36 = vsel %vm1405_vm4, %v1406_v63, %v1407_v22  ;;  %v3107_v56 = vsel %vm1222_vm1, %v1224_v48, %v1226_v11  ;;  %v1288_v60 = vsel %vm1283_vm2, %v1285_v26, %v1287_v55  ;;  %v1469_v24 = vsel %vm1466_vm5, %v1467_v44, %v1468_v6 }
 0x26c   : > { %v1251_v49 = vadd.f32 %v1225_v25, %v1190_v23  ;;  %v1252_v13 = vadd.f32 %v3107_v56, %v1191_v27  ;;  %v3775_v15 = vrot.slane %v3043_v41, 4  ;;  %v3776_v42 = vrot.slane %v3031_v34, 5 }
 0x26d   : > { %v3777_v48 = vrot.slane %v3033_v28, 6  ;;  %v1505_v5 = vrot.slane %v1382_v30, 7  ;;  %v1548_v50 = vmul.f32 0.035994347, %v1116_v61  ;;  %v1556_v23 = vrot.slane %v1260_v9, 1 }
 0x26e   : > { %v1349_v37 = vsel %vm1344_vm3, %v1346_v32, %v3775_v15  ;;  %v1410_v43 = vsel %vm1405_vm4, %v1407_v22, %v3776_v42  ;;  %v1312_v55 = vadd.f32 %v1286_v31, %v1251_v49  ;;  %v1313_v25 = vadd.f32 %v1288_v60, %v1252_v13  ;;  %v1084_v63 = vpop.permute.xlu1 %1083 }
 0x26f   : > { %v1471_v21 = vsel %vm1466_vm5, %v1468_v6, %v3777_v48  ;;  %v1592_v26 = vmul.f32 0.007597402, %v1116_v61  ;;  %v1506_v27 = vsel %vm1503_vm6, %v1504_v45, %v1505_v5  ;;  %v3778_v16 = vrot.slane %v3031_v34, 7  ;;  %v3130_v31 = vpop.permute.xlu0 %1081 }
 0x270   : > { %v1559_v33 = vrot.slane %v1548_v50, 1  ;;  %v1620_v2 = vmul.f32 0.0010281965, %v1116_v61  ;;  %v1373_v22 = vadd.f32 %v1347_v38, %v1312_v55  ;;  %v1374_v44 = vadd.f32 %v1349_v37, %v1313_v25 }
 0x271   : > { %v1508_v32 = vsel %vm1503_vm6, %v1505_v5, %v3778_v16  ;;  %v3779_v28 = vrot.slane %v3041_v53, 1  ;;  %v1600_v6 = vrot.slane %v1592_v26, 2  ;;  %v1628_v34 = vrot.slane %v3089_v54, 3 }
 0x272   : > { %v1631_v60 = vrot.slane %v1620_v2, 3  ;;  %v1665_v49 = vmul.f32 8.922107e-05, %v1116_v61  ;;  %v1434_v13 = vadd.f32 %v1408_v36, %v1373_v22  ;;  %v1435_v15 = vadd.f32 %v1410_v43, %v1374_v44 }
 0x273   : > { %v1558_v30 = vsel %vm1161_vm0, %v1556_v23, %v3779_v28  ;;  %v3780_v9 = vmov %v3779_v28  ;;  %v1601_v38 = vsel %vm1222_vm1, %v1226_v11, %v1600_v6  ;;  %v1684_v37 = vrot.slane %v3084_v18, 4 }
 0x274   : > { %v1560_v45 = vsel %vm1161_vm0, %v3780_v9, %v1559_v33  ;;  %v3781_v42 = vrot.slane %v3037_v8, 3  ;;  %v1687_v50 = vrot.slane %v1665_v49, 4  ;;  %v1118_v54 = vadd.f32 %v1076_v0, %v3022_v51 }
 0x275   : > { %v1495_v61 = vadd.f32 %v1469_v24, %v1434_v13  ;;  %v1496_v36 = vadd.f32 %v1471_v21, %v1435_v15  ;;  %v3783_v43 = vrot.slane %v3049_v7, 4  ;;  %v1117_v11 = vadd.f32 %v1074_v58, %v3009_v46 }
 0x276   : > { %v1630_v48 = vsel %vm1283_vm2, %v1628_v34, %v3781_v42  ;;  %v3782_v53 = vmov %v3781_v42  ;;  %v3154_v25 = vmul.f32 8.922107e-05, %v1118_v54  ;;  %v3156_v8 = vmul.f32 0.0010281965, %v1118_v54  ;;  %v1092_v6 = vpop.permute.xlu1 %1091 }
 0x277   : > { %v1632_v5 = vsel %vm1283_vm2, %v3782_v53, %v1631_v60  ;;  %v1686_v29 = vsel %vm1344_vm3, %v1684_v37, %v3783_v43  ;;  %v3784_v18 = vmov %v3783_v43  ;;  %v3158_v23 = vmul.f32 0.007597402, %v1118_v54  ;;  %v1090_v13 = vpop.permute.xlu0 %1089 }
 0x278   : > { %v1688_v55 = vsel %vm1344_vm3, %v3784_v18, %v1687_v50  ;;  %v1532_v51 = vadd.f32 %v1506_v27, %v1495_v61  ;;  %v1533_v0 = vadd.f32 %v1508_v32, %v1496_v36  ;;  %v3160_v24 = vmul.f32 0.035994347, %v1118_v54 }
 0x279   : > { %v3162_v21 = vmul.f32 0.109341174, %v1118_v54  ;;  %v3564_v26 = vrot.slane %v3156_v8, 1  ;;  %v3563_v46 = vrot.slane %v3158_v23, 2  ;;  %v3166_v7 = vmul.f32 0.21296753, %v1118_v54 }
 0x27a   : > { %v3168_v58 = vmul.f32 0.26596427, %v1118_v54  ;;  %v1540_v16 = vadd.f32 %v1532_v51, %v3093_v59  ;;  %v1541_v33 = vadd.f32 %v1533_v0, %v3043_v41  ;;  %v3562_v27 = vrot.slane %v3160_v24, 3 }
 0x27b   : > { %3785 = vst [vmem:[#allocation92_spill] sm:$0xff] %v3162_v21  ;;  %v3561_v32 = vrot.slane %v3162_v21, 4  ;;  %v3565_v2 = vrot.slane %v3166_v7, 5  ;;  %v1131_v44 = vmul.f32 8.922107e-05, %v1117_v11  ;;  %v1122_v37 = vadd.f32 %v1084_v63, %v3026_v62 }
 0x27c   : > { %3786 = vst [vmem:[#allocation94_spill] sm:$0xff] %v3168_v58  ;;  %v3560_v22 = vrot.slane %v3168_v58, 6  ;;  %v1140_v28 = vmul.f32 0.0010281965, %v1117_v11  ;;  %v1584_v9 = vadd.f32 %v1558_v30, %v1540_v16  ;;  %v1585_v34 = vadd.f32 %v1560_v45, %v1541_v33 }
 0x27d   : > { %v1201_v60 = vmul.f32 0.007597402, %v1117_v11  ;;  %v1262_v49 = vmul.f32 0.035994347, %v1117_v11  ;;  %v1323_v15 = vmul.f32 0.109341174, %v1117_v11 }
 0x27e   : > { %v1167_v59 = vrot.slane %v1140_v28, 1  ;;  %v3177_v41 = vmul.f32 0.21296753, %v1117_v11  ;;  %v1612_v42 = vadd.f32 %v1584_v9, %v3107_v56  ;;  %v1613_v53 = vadd.f32 %v1601_v38, %v1585_v34 }
 0x27f   : > { %v1228_v50 = vrot.slane %v1201_v60, 2  ;;  %v1289_v54 = vrot.slane %v1262_v49, 3  ;;  %v1350_v45 = vrot.slane %v1323_v15, 4  ;;  %v1445_v36 = vmul.f32 0.26596427, %v1117_v11 }
 0x280   : > { %3787 = vst [vmem:[#allocation89_spill] sm:$0xff] %v3177_v41  ;;  %v1169_v30 = vsel %vm1161_vm0, %v1167_v59, %v3564_v26  ;;  %v1411_v61 = vrot.slane %v3177_v41, 5  ;;  %v1656_v43 = vadd.f32 %v1630_v48, %v1612_v42  ;;  %v1657_v18 = vadd.f32 %v1632_v5, %v1613_v53  ;;  %v1016_v53 = vpop.permute.xlu1 %1015 }
 0x281   : > { %v1192_v51 = vadd.f32 %v1169_v30, %v1131_v44  ;;  %v1230_v62 = vsel %vm1222_vm1, %v1228_v50, %v3563_v46  ;;  %v1291_v56 = vsel %vm1283_vm2, %v1289_v54, %v3562_v27  ;;  %v1352_v63 = vsel %vm1344_vm3, %v1350_v45, %v3561_v32 }
 0x282   : > { %v3199_v38 = vsel %vm1405_vm4, %v1411_v61, %v3565_v2  ;;  %v1472_v48 = vrot.slane %v1445_v36, 6  ;;  %v1712_v5 = vadd.f32 %v1686_v29, %v1656_v43  ;;  %v1713_v11 = vadd.f32 %v1688_v55, %v1657_v18 }
 0x283   : > { %v1253_v0 = vadd.f32 %v1230_v62, %v1192_v51  ;;  %v3207_v44 = vmul.f32 8.922107e-05, %v1122_v37  ;;  %v3209_v28 = vmul.f32 0.0010281965, %v1122_v37  ;;  %v3211_v9 = vmul.f32 0.007597402, %v1122_v37 }
 0x284   : > { %v3205_v33 = vsel %vm1466_vm5, %v1472_v48, %v3560_v22  ;;  %1721 = vst.msk [vmem:[%s3213_s14] sm:$0xff] %vm1720_vm7, %v1712_v5  ;;  %v3217_v55 = vmul.f32 0.035994347, %v1122_v37  ;;  %v3219_v34 = vmul.f32 0.109341174, %v1122_v37  ;;  %v1121_v60 = vadd.f32 %v3130_v31, %v3028_v39  ;;  %v1008_v39 = vpop.permute.xlu0 %1007 }
 0x285   : > { %3788 = vst [vmem:[#allocation90_spill] sm:$0xff] %v3205_v33  ;;  %v1314_v29 = vadd.f32 %v1291_v56, %v1253_v0  ;;  %v3570_v49 = vrot.slane %v3209_v28, 1  ;;  %v3569_v59 = vrot.slane %v3211_v9, 2  ;;  %v3227_v15 = vmul.f32 0.21296753, %v1122_v37 }
 0x286   : > { %1722 = vst.msk [vmem:[%s3213_s14 + $0x8] sm:$0xff] %vm1720_vm7, %v1713_v11  ;;  %v1126_v42 = vadd.f32 %v1092_v6, %v3076_v14  ;;  %v3568_v54 = vrot.slane %v3217_v55, 3  ;;  %v3567_v30 = vrot.slane %v3219_v34, 4  ;;  %v3234_v45 = vmul.f32 0.26596427, %v1122_v37 }
 0x287   : > { %v3230_v50 = vadd.f32 %v1352_v63, %v1314_v29  ;;  %v3571_v31 = vrot.slane %v3227_v15, 5  ;;  %v1133_v61 = vmul.f32 8.922107e-05, %v1121_v60  ;;  %v1143_v36 = vmul.f32 0.0010281965, %v1121_v60 }
 0x288   : > { %v1125_v43 = vadd.f32 %v1090_v13, %v3087_v10  ;;  %v3566_v18 = vrot.slane %v3234_v45, 6  ;;  %v1204_v51 = vmul.f32 0.007597402, %v1121_v60  ;;  %v1265_v14 = vmul.f32 0.035994347, %v1121_v60 }
 0x289   : > { %v1048_v6 = vadd.f32 %v1016_v53, %v3020_v40  ;;  %v1172_v62 = vrot.slane %v1143_v36, 1  ;;  %v1326_v56 = vmul.f32 0.109341174, %v1121_v60  ;;  %v3240_v63 = vmul.f32 0.21296753, %v1121_v60 }
 0x28a   : > { %v3243_v37 = vadd.f32 %v1008_v39, %v2998_v19  ;;  %v1233_v48 = vrot.slane %v1204_v51, 2  ;;  %v1294_v5 = vrot.slane %v1265_v14, 3  ;;  %v1448_v11 = vmul.f32 0.26596427, %v1121_v60 }
 0x28b   : > { %v3245_v0 = vmul.f32 8.922107e-05, %v1126_v42  ;;  %v1174_v10 = vsel %vm1161_vm0, %v1172_v62, %v3570_v49  ;;  %v1355_v13 = vrot.slane %v1326_v56, 4  ;;  %v1416_v29 = vrot.slane %v3240_v63, 5 }
 0x28c   : > { %v1194_v53 = vadd.f32 %v1174_v10, %v1133_v61  ;;  %v1235_v19 = vsel %vm1222_vm1, %v1233_v48, %v3569_v59  ;;  %v1296_v60 = vsel %vm1283_vm2, %v1294_v5, %v3568_v54  ;;  %v1477_v39 = vrot.slane %v1448_v11, 6 }
 0x28d   : > { %v1357_v36 = vsel %vm1344_vm3, %v1355_v13, %v3567_v30  ;;  %v3264_v51 = vsel %vm1405_vm4, %v1416_v29, %v3571_v31  ;;  %v3266_v14 = vmul.f32 0.0010281965, %v1126_v42  ;;  %v1208_v61 = vmul.f32 0.007597402, %v1126_v42 }
 0x28e   : > { %v1255_v62 = vadd.f32 %v1235_v19, %v1194_v53  ;;  %v3271_v56 = vsel %vm1466_vm5, %v1477_v39, %v3566_v18  ;;  %v3273_v48 = vmul.f32 0.035994347, %v1126_v42  ;;  %v3275_v5 = vmul.f32 0.109341174, %v1126_v42  ;;  %v1096_v19 = vpop.permute.xlu2 %1095 }
 0x28f   : > { %v1178_v11 = vrot.slane %v3266_v14, 1  ;;  %v1239_v10 = vrot.slane %v1208_v61, 2  ;;  %v1391_v13 = vmul.f32 0.21296753, %v1126_v42  ;;  %v1452_v16 = vmul.f32 0.26596427, %v1126_v42 }
 0x290   : > { %v1316_v29 = vadd.f32 %v1296_v60, %v1255_v62  ;;  %v1300_v22 = vrot.slane %v3273_v48, 3  ;;  %v1361_v32 = vrot.slane %v3275_v5, 4  ;;  %v1135_v53 = vmul.f32 8.922107e-05, %v1125_v43 }
 0x291   : > { %v1422_v27 = vrot.slane %v1391_v13, 5  ;;  %v1483_v46 = vrot.slane %v1452_v16, 6  ;;  %v1146_v39 = vmul.f32 0.0010281965, %v1125_v43  ;;  %v1207_v26 = vmul.f32 0.007597402, %v1125_v43 }
 0x292   : > { %v3280_v2 = vadd.f32 %v1357_v36, %v1316_v29  ;;  %v1268_v40 = vmul.f32 0.035994347, %v1125_v43  ;;  %v1329_v18 = vmul.f32 0.109341174, %v1125_v43  ;;  %v1390_v30 = vmul.f32 0.21296753, %v1125_v43 }
 0x293   : > { %v1177_v54 = vrot.slane %v1146_v39, 1  ;;  %v1238_v61 = vrot.slane %v1207_v26, 2  ;;  %v1451_v59 = vmul.f32 0.26596427, %v1125_v43  ;;  %v1128_v42 = vadd.f32 %v1096_v19, %v1048_v6 }
 0x294   : > { %v1299_v60 = vrot.slane %v1268_v40, 3  ;;  %v1360_v62 = vrot.slane %v1329_v18, 4  ;;  %v1421_v49 = vrot.slane %v1390_v30, 5  ;;  %v1519_v31 = vrot.slane %v1390_v30, 7 }
 0x295   : > { %v1179_v1 = vsel %vm1161_vm0, %v1177_v54, %v1178_v11  ;;  %v1240_v41 = vsel %vm1222_vm1, %v1238_v61, %v1239_v10  ;;  %v1482_v16 = vrot.slane %v1451_v59, 6  ;;  %v1148_v33 = vmul.f32 0.0010281965, %v3069_v3 }
 0x296   : > { %v1196_v36 = vadd.f32 %v1179_v1, %v1135_v53  ;;  %v1301_v29 = vsel %vm1283_vm2, %v1299_v60, %v1300_v22  ;;  %v1362_v58 = vsel %vm1344_vm3, %v1360_v62, %v1361_v32  ;;  %v1423_v26 = vsel %vm1405_vm4, %v1421_v49, %v1422_v27 }
 0x297   : > { %v1484_v43 = vsel %vm1466_vm5, %v1482_v16, %v1483_v46  ;;  %v1180_v6 = vrot.slane %v1148_v33, 1  ;;  %v1209_v18 = vmul.f32 0.007597402, %v3069_v3  ;;  %v1270_v30 = vmul.f32 0.035994347, %v3069_v3 }
 0x298   : > { %v1257_v54 = vadd.f32 %v1240_v41, %v1196_v36  ;;  %v3292_v40 = vmul.f32 0.109341174, %v3069_v3  ;;  %v3789_v59 = vrot.slane %v3079_v47, 5  ;;  %v3790_v53 = vrot.slane %v3082_v52, 6 }
 0x299   : > { %v1181_v49 = vsel %vm1161_vm0, %v1178_v11, %v1180_v6  ;;  %v1241_v39 = vrot.slane %v1209_v18, 2  ;;  %v1302_v61 = vrot.slane %v1270_v30, 3  ;;  %v1520_v60 = vrot.slane %v1391_v13, 7 }
 0x29a   : > { %v1425_v1 = vsel %vm1405_vm4, %v1422_v27, %v3789_v59  ;;  %v1486_v19 = vsel %vm1466_vm5, %v1483_v46, %v3790_v53  ;;  %v1318_v62 = vadd.f32 %v1301_v29, %v1257_v54  ;;  %v1197_v16 = vadd.f32 %v1181_v49, %v3245_v0 }
 0x29b   : > { %v1363_v41 = vrot.slane %v3292_v40, 4  ;;  %v1522_v36 = vrot.slane %v3079_v47, 7  ;;  %v1242_v20 = vsel %vm1222_vm1, %v1239_v10, %v1241_v39  ;;  %v1303_v27 = vsel %vm1283_vm2, %v1300_v22, %v1302_v61 }
 0x29c   : > { %v1521_v52 = vsel %vm1503_vm6, %v1519_v31, %v1520_v60  ;;  %v1551_v59 = vmul.f32 0.035994347, %v1128_v42  ;;  %v1379_v46 = vadd.f32 %v1362_v58, %v1318_v62  ;;  %v1258_v53 = vadd.f32 %v1242_v20, %v1197_v16 }
 0x29d   : > { %v1364_v11 = vsel %vm1344_vm3, %v1361_v32, %v1363_v41  ;;  %v1523_v13 = vsel %vm1503_vm6, %v1520_v60, %v1522_v36  ;;  %v1571_v29 = vrot.slane %v3273_v48, 1  ;;  %v1572_v6 = vrot.slane %v1270_v30, 1  ;;  %v1088_v48 = vpop.permute.xlu1 %1087 }
 0x29e   : > { %v1574_v18 = vrot.slane %v1551_v59, 1  ;;  %v1595_v54 = vmul.f32 0.007597402, %v1128_v42  ;;  %v1319_v49 = vadd.f32 %v1303_v27, %v1258_v53  ;;  %v1440_v47 = vadd.f32 %v1423_v26, %v1379_v46 }
 0x29f   : > { %v1623_v21 = vmul.f32 0.0010281965, %v1128_v42  ;;  %v1643_v10 = vrot.slane %v3266_v14, 3  ;;  %v1573_v22 = vsel %vm1161_vm0, %v1571_v29, %v1572_v6  ;;  %v1644_v61 = vrot.slane %v1148_v33, 3 }
 0x2a0   : > { %v1575_v31 = vsel %vm1161_vm0, %v1572_v6, %v1574_v18  ;;  %v1606_v58 = vrot.slane %v1595_v54, 2  ;;  %v1380_v62 = vadd.f32 %v1364_v11, %v1319_v49  ;;  %v1501_v32 = vadd.f32 %v1484_v43, %v1440_v47 }
 0x2a1   : > { %v1646_v16 = vrot.slane %v1623_v21, 3  ;;  %v1670_v60 = vmul.f32 8.922107e-05, %v3069_v3  ;;  %v1645_v41 = vsel %vm1283_vm2, %v1643_v10, %v1644_v61  ;;  %v1671_v26 = vmul.f32 8.922107e-05, %v1128_v42 }
 0x2a2   : > { %v1607_v30 = vsel %vm1222_vm1, %v1241_v39, %v1606_v58  ;;  %v1699_v36 = vrot.slane %v3245_v0, 4  ;;  %v1441_v14 = vadd.f32 %v1425_v1, %v1380_v62  ;;  %v1538_v27 = vadd.f32 %v1521_v52, %v1501_v32 }
 0x2a3   : > { %v1647_v59 = vsel %vm1283_vm2, %v1644_v61, %v1646_v16  ;;  %v1700_v46 = vrot.slane %v1670_v60, 4  ;;  %v1702_v53 = vrot.slane %v1671_v26, 4  ;;  %v1124_v33 = vadd.f32 %v1088_v48, %v3243_v37 }
 0x2a4   : > { %v3320_v21 = vmul.f32 0.0010281965, %v3035_v12  ;;  %v1206_v3 = vmul.f32 0.007597402, %v3035_v12  ;;  %v1502_v43 = vadd.f32 %v1486_v19, %v1441_v14  ;;  %v1546_v39 = vadd.f32 %v1538_v27, %v3275_v5 }
 0x2a5   : > { %v1701_v42 = vsel %vm1344_vm3, %v1699_v36, %v1700_v46  ;;  %v1267_v0 = vmul.f32 0.035994347, %v3035_v12  ;;  %v1703_v1 = vsel %vm1344_vm3, %v1700_v46, %v1702_v53  ;;  %v3329_v29 = vmul.f32 0.109341174, %v3035_v12 }
 0x2a6   : > { %v1175_v52 = vrot.slane %v3320_v21, 1  ;;  %v1236_v11 = vrot.slane %v1206_v3, 2  ;;  %v1539_v37 = vadd.f32 %v1523_v13, %v1502_v43  ;;  %v1590_v6 = vadd.f32 %v1573_v22, %v1546_v39 }
 0x2a7   : > { %v1297_v18 = vrot.slane %v1267_v0, 3  ;;  %v3791_v54 = vrot.slane %v3055_v35, 5  ;;  %v3792_v19 = vrot.slane %v3227_v15, 5  ;;  %v3793_v49 = vrot.slane %v3209_v28, 1 }
 0x2a8   : > { %v3794_v10 = vrot.slane %v3211_v9, 2  ;;  %v1358_v61 = vrot.slane %v3329_v29, 4  ;;  %v1438_v13 = vadd.f32 %v3264_v51, %v3280_v2  ;;  %v1547_v22 = vadd.f32 %v1539_v37, %v3292_v40 }
 0x2a9   : > { %v1420_v5 = vsel %vm1405_vm4, %v3792_v19, %v3791_v54  ;;  %v1176_v47 = vsel %vm1161_vm0, %v3793_v49, %v1175_v52  ;;  %v1618_v62 = vadd.f32 %v1590_v6, %v1242_v20  ;;  %v3795_v16 = vrot.slane %v3217_v55, 3 }
 0x2aa   : > { %v1237_v58 = vsel %vm1222_vm1, %v3794_v10, %v1236_v11  ;;  %v1195_v32 = vadd.f32 %v1176_v47, %v3207_v44  ;;  %v3796_v48 = vrot.slane %v3219_v34, 4  ;;  %v3797_v26 = vrot.slane %v3058_v17, 6 }
 0x2ab   : > { %v1298_v60 = vsel %vm1283_vm2, %v3795_v16, %v1297_v18  ;;  %v3798_v36 = vrot.slane %v3234_v45, 6  ;;  %v1499_v2 = vadd.f32 %v3271_v56, %v1438_v13  ;;  %v1515_v20 = vrot.slane %v3227_v15, 7 }
 0x2ac   : > { %v1359_v9 = vsel %vm1344_vm3, %v3796_v48, %v1358_v61  ;;  %v1591_v51 = vadd.f32 %v1575_v31, %v1547_v22  ;;  %v1662_v40 = vadd.f32 %v1645_v41, %v1618_v62  ;;  %v1256_v27 = vadd.f32 %v1237_v58, %v1195_v32 }
 0x2ad   : > { %v1481_v14 = vsel %vm1466_vm5, %v3798_v36, %v3797_v26  ;;  %v1517_v46 = vrot.slane %v3055_v35, 7  ;;  %v3799_v53 = vrot.slane %v3240_v63, 7  ;;  %v1550_v43 = vmul.f32 0.035994347, %v1124_v33 }
 0x2ae   : > { %v1566_v17 = vrot.slane %v3217_v55, 1  ;;  %v1567_v45 = vrot.slane %v1267_v0, 1  ;;  %v1619_v39 = vadd.f32 %v1607_v30, %v1591_v51  ;;  %v1718_v52 = vadd.f32 %v1701_v42, %v1662_v40 }
 0x2af   : > { %v1516_v3 = vsel %vm1503_vm6, %v3799_v53, %v1515_v20  ;;  %v1317_v37 = vadd.f32 %v1298_v60, %v1256_v27  ;;  %v1518_v56 = vsel %vm1503_vm6, %v1515_v20, %v1517_v46  ;;  %v1569_v41 = vrot.slane %v1550_v43, 1 }
 0x2b0   : > { %v1536_v15 = vadd.f32 %v1516_v3, %v1499_v2  ;;  %v1568_v31 = vsel %vm1161_vm0, %v1566_v17, %v1567_v45  ;;  %v1594_v6 = vmul.f32 0.007597402, %v1124_v33  ;;  %v1663_v18 = vadd.f32 %v1647_v59, %v1619_v39  ;;  %1727 = vst.msk [vmem:[%s3213_s14 + $0x30] sm:$0xff] %vm1720_vm7, %v1718_v52  ;;  %v3805_v52 = vld [vmem:[#allocation92_spill] sm:$0xff] }
 0x2b1   : > { %v1378_v35 = vadd.f32 %v1359_v9, %v1317_v37  ;;  %v1622_v63 = vmul.f32 0.0010281965, %v1124_v33  ;;  %v1638_v54 = vrot.slane %v3209_v28, 3  ;;  %v1570_v30 = vsel %vm1161_vm0, %v1567_v45, %v1569_v41 }
 0x2b2   : > { %v1544_v55 = vadd.f32 %v1536_v15, %v3219_v34  ;;  %v1604_v42 = vrot.slane %v1594_v6, 2  ;;  %v1639_v0 = vrot.slane %v3320_v21, 3  ;;  %v1719_v19 = vadd.f32 %v1703_v1, %v1663_v18  ;;  %v3807_v15 = vld [vmem:[#allocation8_spill] sm:$0xff] }
 0x2b3   : > { %v1439_v49 = vadd.f32 %v1420_v5, %v1378_v35  ;;  %v1641_v47 = vrot.slane %v1622_v63, 3  ;;  %v1668_v10 = vmul.f32 8.922107e-05, %v3035_v12  ;;  %v1669_v22 = vmul.f32 8.922107e-05, %v1124_v33 }
 0x2b4   : > { %v1588_v59 = vadd.f32 %v1568_v31, %v1544_v55  ;;  %v1605_v61 = vsel %vm1222_vm1, %v1236_v11, %v1604_v42  ;;  %v1640_v13 = vsel %vm1283_vm2, %v1638_v54, %v1639_v0  ;;  %1728 = vst.msk [vmem:[%s3213_s14 + $0x38] sm:$0xff] %vm1720_vm7, %v1719_v19  ;;  %v1694_v62 = vrot.slane %v3207_v44, 4  ;;  %v3809_v31 = vld [vmem:[#allocation94_spill] sm:$0xff]  ;;  %v1080_v42 = vpop.permute.xlu0 %1079 }
 0x2b5   : > { %v1500_v28 = vadd.f32 %v1481_v14, %v1439_v49  ;;  %v1642_v34 = vsel %vm1283_vm2, %v1639_v0, %v1641_v47  ;;  %v1695_v32 = vrot.slane %v1668_v10, 4  ;;  %v1697_v1 = vrot.slane %v1669_v22, 4  ;;  %v3812_v0 = vld [vmem:[#allocation89_spill] sm:$0xff] }
 0x2b6   : > { %v1616_v21 = vadd.f32 %v1588_v59, %v1237_v58  ;;  %v3381_v5 = vmul.f32 0.0010281965, %v3024_v4  ;;  %v3384_v12 = vmul.f32 0.007597402, %v3024_v4  ;;  %v1264_v33 = vmul.f32 0.035994347, %v3024_v4 }
 0x2b7   : > { %v1537_v11 = vadd.f32 %v1518_v56, %v1500_v28  ;;  %v1696_v16 = vsel %vm1344_vm3, %v1694_v62, %v1695_v32  ;;  %v3389_v60 = vmul.f32 0.109341174, %v3024_v4  ;;  %v1698_v44 = vsel %vm1344_vm3, %v1695_v32, %v1697_v1  ;;  %v3814_v62 = vld [vmem:[#allocation82_spill] sm:$0xff] }
 0x2b8   : > { %v1660_v48 = vadd.f32 %v1640_v13, %v1616_v21  ;;  %v1170_v58 = vrot.slane %v3381_v5, 1  ;;  %v1231_v9 = vrot.slane %v3384_v12, 2  ;;  %v1292_v36 = vrot.slane %v1264_v33, 3 }
 0x2b9   : > { %v1545_v26 = vadd.f32 %v1537_v11, %v3329_v29  ;;  %v1353_v14 = vrot.slane %v3389_v60, 4  ;;  %v3800_v2 = vrot.slane %v3047_v57, 5  ;;  %v3801_v20 = vrot.slane %v3166_v7, 5 }
 0x2ba   : > { %v1716_v40 = vadd.f32 %v1696_v16, %v1660_v48  ;;  %v3802_v27 = vrot.slane %v3156_v8, 1  ;;  %v3803_v53 = vrot.slane %v3158_v23, 2  ;;  %v1436_v29 = vadd.f32 %v3199_v38, %v3230_v50  ;;  %v3811_v38 = vld [vmem:[#allocation90_spill] sm:$0xff] }
 0x2bb   : > { %v1415_v51 = vsel %vm1405_vm4, %v3801_v20, %v3800_v2  ;;  %v1589_v43 = vadd.f32 %v1570_v30, %v1545_v26  ;;  %v3804_v45 = vrot.slane %v3160_v24, 3  ;;  %v3806_v37 = vrot.slane %v3805_v52, 4 }
 0x2bc   : > { %v1171_v46 = vsel %vm1161_vm0, %v3802_v27, %v1170_v58  ;;  %v1232_v3 = vsel %vm1222_vm1, %v3803_v53, %v1231_v9  ;;  %1725 = vst.msk [vmem:[%s3213_s14 + $0x20] sm:$0xff] %vm1720_vm7, %v1716_v40  ;;  %v3808_v23 = vrot.slane %v3807_v15, 6  ;;  %v3810_v41 = vrot.slane %v3809_v31, 6 }
 0x2bd   : > { %v1193_v17 = vadd.f32 %v1171_v46, %v3154_v25  ;;  %v1293_v39 = vsel %vm1283_vm2, %v3804_v45, %v1292_v36  ;;  %v1354_v56 = vsel %vm1344_vm3, %v3806_v37, %v1353_v14  ;;  %v1497_v50 = vadd.f32 %v3811_v38, %v1436_v29 }
 0x2be   : > { %v1476_v6 = vsel %vm1466_vm5, %v3810_v41, %v3808_v23  ;;  %v1510_v18 = vrot.slane %v3166_v7, 7  ;;  %v1512_v35 = vrot.slane %v3047_v57, 7  ;;  %v1617_v63 = vadd.f32 %v1605_v61, %v1589_v43 }
 0x2bf   : > { %v1254_v54 = vadd.f32 %v1232_v3, %v1193_v17  ;;  %v1561_v55 = vrot.slane %v3160_v24, 1  ;;  %v1562_v30 = vrot.slane %v1264_v33, 1  ;;  %v3813_v19 = vrot.slane %v3812_v0, 7 }
 0x2c0   : > { %v1513_v47 = vsel %vm1503_vm6, %v1510_v18, %v1512_v35  ;;  %v1633_v10 = vrot.slane %v3156_v8, 3  ;;  %v1634_v59 = vrot.slane %v3381_v5, 3  ;;  %v1661_v7 = vadd.f32 %v1642_v34, %v1617_v63 }
 0x2c1   : > { %v1511_v49 = vsel %vm1503_vm6, %v3813_v19, %v1510_v18  ;;  %v1315_v13 = vadd.f32 %v1293_v39, %v1254_v54  ;;  %v1563_v61 = vsel %vm1161_vm0, %v1561_v55, %v1562_v30  ;;  %v1666_v22 = vmul.f32 8.922107e-05, %v3024_v4 }
 0x2c2   : > { %v1534_v57 = vadd.f32 %v1511_v49, %v1497_v50  ;;  %v1635_v24 = vsel %vm1283_vm2, %v1633_v10, %v1634_v59  ;;  %v1689_v28 = vrot.slane %v3154_v25, 4  ;;  %v1120_v32 = vadd.f32 %v1080_v42, %v3814_v62 }
 0x2c3   : > { %v1717_v21 = vadd.f32 %v1698_v44, %v1661_v7  ;;  %v1376_v1 = vadd.f32 %v1354_v56, %v1315_v13  ;;  %v1690_v12 = vrot.slane %v1666_v22, 4 }
 0x2c4   : > { %v1542_v8 = vadd.f32 %v1534_v57, %v3805_v52  ;;  %v1549_v11 = vmul.f32 0.035994347, %v1120_v32  ;;  %v1593_v5 = vmul.f32 0.007597402, %v1120_v32  ;;  %v1621_v33 = vmul.f32 0.0010281965, %v1120_v32 }
 0x2c5   : > { %1726 = vst.msk [vmem:[%s3213_s14 + $0x28] sm:$0xff] %vm1720_vm7, %v1717_v21  ;;  %v1437_v34 = vadd.f32 %v1415_v51, %v1376_v1  ;;  %v1667_v48 = vmul.f32 8.922107e-05, %v1120_v32  ;;  %v1691_v4 = vsel %vm1344_vm3, %v1689_v28, %v1690_v12 }
 0x2c6   : > { %v1586_v16 = vadd.f32 %v1563_v61, %v1542_v8  ;;  %v1564_v58 = vrot.slane %v1549_v11, 1  ;;  %v1602_v25 = vrot.slane %v1593_v5, 2  ;;  %v1636_v36 = vrot.slane %v1621_v33, 3 }
 0x2c7   : > { %v1498_v26 = vadd.f32 %v1476_v6, %v1437_v34  ;;  %v1692_v14 = vrot.slane %v1667_v48, 4 }
 0x2c8   : > { %v1614_v44 = vadd.f32 %v1586_v16, %v1232_v3  ;;  %v1565_v2 = vsel %vm1161_vm0, %v1562_v30, %v1564_v58  ;;  %v1603_v20 = vsel %vm1222_vm1, %v1231_v9, %v1602_v25  ;;  %v1637_v27 = vsel %vm1283_vm2, %v1634_v59, %v1636_v36 }
 0x2c9   : > { %v1535_v40 = vadd.f32 %v1513_v47, %v1498_v26  ;;  %v1693_v46 = vsel %vm1344_vm3, %v1690_v12, %v1692_v14 }
 0x2ca   : > { %v1658_v51 = vadd.f32 %v1635_v24, %v1614_v44 }
 0x2cb   : > { %v1543_v53 = vadd.f32 %v1535_v40, %v3389_v60 }
 0x2cc   : > { %v1714_v29 = vadd.f32 %v1691_v4, %v1658_v51 }
 0x2cd   : > { %v1587_v3 = vadd.f32 %v1565_v2, %v1543_v53 }
 0x2ce   : > { %1723 = vst.msk [vmem:[%s3213_s14 + $0x10] sm:$0xff] %vm1720_vm7, %v1714_v29 }
 0x2cf   : > { %v1615_v9 = vadd.f32 %v1603_v20, %v1587_v3 }
 0x2d1   : > { %v1659_v43 = vadd.f32 %v1637_v27, %v1615_v9 }
 0x2d3   : > { %v1715_v17 = vadd.f32 %v1693_v46, %v1659_v43 }
 0x2d5   : > { %1724 = vst.msk [vmem:[%s3213_s14 + $0x18] sm:$0xff] %vm1720_vm7, %v1715_v17 }
 0x2d6   : > { %1905 = shalt.err (!%p1902_p3)
}
 0x2d7   : > { %s1954_s2 = smov 128   ;;  %s1955_s3 = smov 8  }
 0x2d8   : > { %1825 = dma.vmem_to_hbm [thread:$0]  (%p2004_p5), %s1744_s22, 1024, %s1746_s23, %s1730_s10, %s1954_s2, %s1954_s2, %s1955_s3  }
 0x2d9 PF: > { %p1831_p4 = scmp.ge.s32.totalorder %s1940_s9, 2  ;;  %s1760_s4 = sand.u32 1, %s1928_s6  }
 0x2da   : > { %s1761_s5 = scalar_lea.sflag [#allocation3], %s1760_s4 }
 0x2db   : > { %p1828_p7 = pnand %p1831_p4, %p2008_p6 }
 0x2dd   : > { %p1829_p8 = pneg %p1828_p7 }
 0x2df   : > { %1923 = dma.done.wait (%p1829_p8), %s1761_s5, 1024  }
 0x2e0   : > { %1925 = vsyncadd (%p1829_p8), %s1761_s5, 4294966272  ;;  %p11_p9 = scmp.ge.s32.totalorder %s1991_s12, 4   ;;  %s3815_s6 = smov %s1932_s7 }
 0x2e1   : > { %s3816_s7 = smov %s1936_s8  ;;  %s3817_s8 = smov %s2002_s15 }
 0x2e2   : > { %s3818_s9 = smov %s1991_s12  ;;  %13 = sbr.rel (!%p11_p9) target bundleno = 3 (0x3), region = 59 }
 0x2e7   :  { %1767 = vsyncpa [#allocation3], 1 }
 0x2e8   :  { %1769 = vsyncpa [#allocation3 + $0x1], 1 }

</bundles_post_ra>
